<compile_context>
chip_gen: v7x
topology: tpu7x:2x2x1
jax: 0.10.0
libtpu: 0.0.40
codegen_flags: <defaults>
</compile_context>

<pallas_src>
import math
from functools import partial

import jax
import jax.numpy as jnp
from jax.experimental import pallas as pl
from jax.experimental.pallas import tpu as pltpu

# ---------------- model hyper-params (small, self-consistent) ----------------
S = 8            # sequence length
B = 2            # batch
D = 32           # d_model
H = 4            # num heads
DH = D // H      # head dim
FF = 64          # feed-forward hidden dim
NUM_LAYERS = 2
EPS = 1e-5


def _layer_norm(x, gamma, beta):
    mu = jnp.mean(x, axis=-1, keepdims=True)
    var = jnp.mean((x - mu) ** 2, axis=-1, keepdims=True)
    return (x - mu) * jax.lax.rsqrt(var + EPS) * gamma + beta


def encoder_kernel(x_ref, mask_ref,
                   wqkv_ref, bqkv_ref, wo_ref,
                   w1_ref, b1_ref, w2_ref,
                   vecs_ref,
                   out_ref, *, num_layers):
    """Fused N-layer transformer encoder; whole (B, S, D) batch in one step."""
    # NOTE: inputs are f32 here; if a caller ever feeds bf16, drop this astype
    # and let the MXU consume bf16 operands directly (f32 accumulation).
    x = x_ref[...].astype(jnp.float32).reshape(B * S, D)     # (B*S, D)
    mask = mask_ref[...].astype(jnp.float32)                 # (S, S) additive

    wqkv = wqkv_ref[...]                                     # (D, 3D)
    bqkv = bqkv_ref[...]                                     # (1, 3D)
    wo = wo_ref[...]                                         # (D, D)
    w1 = w1_ref[...]                                         # (D, FF)
    b1 = b1_ref[...]                                         # (1, FF)
    w2 = w2_ref[...]                                         # (FF, D)
    vecs = vecs_ref[...]                                     # (6, D)
    bo, b2 = vecs[0:1, :], vecs[1:2, :]
    g1, be1 = vecs[2:3, :], vecs[3:4, :]
    g2, be2 = vecs[4:5, :], vecs[5:6, :]

    scale = 1.0 / math.sqrt(DH)

    for _ in range(num_layers):              # cloned layers share parameters
        # ---- packed QKV projection: one MXU push ----
        qkv = jnp.dot(x, wqkv, preferred_element_type=jnp.float32) + bqkv
        q = qkv[:, 0 * D:1 * D].reshape(B, S, D)
        k = qkv[:, 1 * D:2 * D].reshape(B, S, D)
        v = qkv[:, 2 * D:3 * D].reshape(B, S, D)

        # ---- per-head attention, batched over the batch dimension ----
        head_outs = []
        for h in range(H):                   # static head loop (H pushes/stage)
            qh = q[:, :, h * DH:(h + 1) * DH]              # (B, S, DH)
            kh = k[:, :, h * DH:(h + 1) * DH]
            vh = v[:, :, h * DH:(h + 1) * DH]
            s = jnp.einsum('bqd,bkd->bqk', qh, kh,
                           preferred_element_type=jnp.float32) * scale + mask
            s = s - jnp.max(s, axis=-1, keepdims=True)
            p = jnp.exp(s)
            p = p * pl.reciprocal(jnp.sum(p, axis=-1, keepdims=True), approx=True)
            head_outs.append(jnp.einsum('bqk,bkd->bqd', p, vh,
                                        preferred_element_type=jnp.float32))
        attn = jnp.concatenate(head_outs, axis=-1).reshape(B * S, D)
        attn = jnp.dot(attn, wo, preferred_element_type=jnp.float32) + bo

        # ---- residual + LayerNorm1 ----
        x1 = _layer_norm(x + attn, g1, be1)

        # ---- feed-forward ----
        hdn = jnp.maximum(
            jnp.dot(x1, w1, preferred_element_type=jnp.float32) + b1, 0.0)
        ffn = jnp.dot(hdn, w2, preferred_element_type=jnp.float32) + b2

        # ---- residual + LayerNorm2 ----
        x = _layer_norm(x1 + ffn, g2, be2)

    out_ref[...] = x.reshape(B, S, D).astype(out_ref.dtype)


def _full(shape):
    return pl.BlockSpec(shape, lambda i: (0,) * len(shape))


@partial(jax.jit, static_argnames=("num_layers",))
def transformer_encoder(src_sbd, src_mask, params, num_layers=NUM_LAYERS):
    """src_sbd: (S, B, D) PyTorch-default layout; returns same layout."""
    (wq, bq, wk, bk, wv, bv, wo, bo, g1, be1, w1, b1, w2, b2, g2, be2) = params

    # Pack weights once per call (tiny concats, single fused pallas_call after).
    wqkv = jnp.concatenate([wq, wk, wv], axis=1)             # (D, 3D)
    bqkv = jnp.concatenate([bq, bk, bv], axis=1)             # (1, 3D)
    vecs = jnp.concatenate([bo, b2, g1, be1, g2, be2], axis=0)  # (6, D)

    mask = (jnp.zeros((S, S), jnp.float32) if src_mask is None
            else src_mask.astype(jnp.float32))
    x = jnp.transpose(src_sbd, (1, 0, 2))                    # -> (B, S, D), once

    in_specs = [
        _full((B, S, D)),        # src (whole batch, single grid step)
        _full((S, S)),           # additive mask
        _full((D, 3 * D)),       # packed Wq|Wk|Wv
        _full((1, 3 * D)),       # packed bq|bk|bv
        _full((D, D)),           # Wo
        _full((D, FF)),          # W1
        _full((1, FF)),          # b1
        _full((FF, D)),          # W2
        _full((6, D)),           # [bo, b2, ln1_g, ln1_b, ln2_g, ln2_b]
    ]

    out = pl.pallas_call(
        partial(encoder_kernel, num_layers=num_layers),
        out_shape=jax.ShapeDtypeStruct((B, S, D), src_sbd.dtype),
        grid_spec=pltpu.PrefetchScalarGridSpec(
            num_scalar_prefetch=0,
            grid=(1,),
            in_specs=in_specs,
            out_specs=_full((B, S, D)),
        ),
        compiler_params=pltpu.CompilerParams(
            dimension_semantics=("arbitrary",)),
    )(x, mask, wqkv, bqkv, wo, w1, b1, w2, vecs)

    return jnp.transpose(out, (1, 0, 2))                     # -> (S, B, D)


# ---------------- pure-JAX reference (for sanity check) ----------------
def _ref_layer(x, mask, params):
    (wq, bq, wk, bk, wv, bv, wo, bo, g1, be1, w1, b1, w2, b2, g2, be2) = params
    q = x @ wq + bq
    k = x @ wk + bk
    v = x @ wv + bv
    qh = q.reshape(B, S, H, DH).transpose(0, 2, 1, 3)
    kh = k.reshape(B, S, H, DH).transpose(0, 2, 1, 3)
    vh = v.reshape(B, S, H, DH).transpose(0, 2, 1, 3)
    s = jnp.einsum("bhqd,bhkd->bhqk", qh, kh) / math.sqrt(DH) + mask
    p = jax.nn.softmax(s, axis=-1)
    a = jnp.einsum("bhqk,bhkd->bhqd", p, vh).transpose(0, 2, 1, 3).reshape(B, S, D)
    a = a @ wo + bo
    x1 = _layer_norm(x + a, g1, be1)
    f = jnp.maximum(x1 @ w1 + b1, 0.0) @ w2 + b2
    return _layer_norm(x1 + f, g2, be2)


def _ref_encoder(src_sbd, mask, params, num_layers):
    x = jnp.transpose(src_sbd, (1, 0, 2))
    for _ in range(num_layers):
        x = _ref_layer(x, mask, params)
    return jnp.transpose(x, (1, 0, 2))


def init_params(key):
    ks = jax.random.split(key, 8)
    sc = 0.1
    wq = sc * jax.random.normal(ks[0], (D, D), jnp.float32)
    wk = sc * jax.random.normal(ks[1], (D, D), jnp.float32)
    wv = sc * jax.random.normal(ks[2], (D, D), jnp.float32)
    wo = sc * jax.random.normal(ks[3], (D, D), jnp.float32)
    w1 = sc * jax.random.normal(ks[4], (D, FF), jnp.float32)
    w2 = sc * jax.random.normal(ks[5], (FF, D), jnp.float32)
    bq = jnp.zeros((1, D), jnp.float32)
    bk = jnp.zeros((1, D), jnp.float32)
    bv = jnp.zeros((1, D), jnp.float32)
    bo = 0.01 * jax.random.normal(ks[6], (1, D), jnp.float32)
    b1 = jnp.zeros((1, FF), jnp.float32)
    b2 = 0.01 * jax.random.normal(ks[7], (1, D), jnp.float32)
    g1 = jnp.ones((1, D), jnp.float32)
    be1 = jnp.zeros((1, D), jnp.float32)
    g2 = jnp.ones((1, D), jnp.float32)
    be2 = jnp.zeros((1, D), jnp.float32)
    return (wq, bq, wk, bk, wv, bv, wo, bo, g1, be1, w1, b1, w2, b2, g2, be2)


if __name__ == "__main__":
    key = jax.random.PRNGKey(0)
    k_x, k_p = jax.random.split(key)
    # layout: wrapper input is (S, B, D) = (seq, batch, d_model), PyTorch default.
    src = jax.random.normal(k_x, (S, B, D), jnp.float32)
    params = init_params(k_p)

    out = transformer_encoder(src, None, params, num_layers=NUM_LAYERS)
    out = jax.block_until_ready(out)

    ref = _ref_encoder(src, jnp.zeros((S, S), jnp.float32), params, NUM_LAYERS)
    assert out.shape == (S, B, D)
    assert bool(jnp.all(jnp.isfinite(out)))
    assert bool(jnp.allclose(out, ref, rtol=1e-3, atol=1e-3))
    print("KERNEL_OK")
</pallas_src>

<mosaic_0001>
module attributes {stable_mosaic.version = 11 : i64} {
  func.func @encoder_kernel(%arg0: i32, %arg1: memref<2x8x32xf32, #tpu.memory_space<vmem>>, %arg2: memref<8x8xf32, #tpu.memory_space<vmem>>, %arg3: memref<32x96xf32, #tpu.memory_space<vmem>>, %arg4: memref<1x96xf32, #tpu.memory_space<vmem>>, %arg5: memref<32x32xf32, #tpu.memory_space<vmem>>, %arg6: memref<32x64xf32, #tpu.memory_space<vmem>>, %arg7: memref<1x64xf32, #tpu.memory_space<vmem>>, %arg8: memref<64x32xf32, #tpu.memory_space<vmem>>, %arg9: memref<6x32xf32, #tpu.memory_space<vmem>>, %arg10: memref<2x8x32xf32, #tpu.memory_space<vmem>>) attributes {dimension_semantics = [#tpu.dimension_semantics<arbitrary>], iteration_bounds = array<i64: 1>, scalar_prefetch = 0 : i64, scratch_operands = 0 : i64, tpu.core_type = #tpu.core_type<tc>, window_params = [{pipeline_mode = #tpu.pipeline_mode<synchronous>, transform_indices = @transform_0, window_bounds = array<i64: 2, 8, 32>}, {pipeline_mode = #tpu.pipeline_mode<synchronous>, transform_indices = @transform_1, window_bounds = array<i64: 8, 8>}, {pipeline_mode = #tpu.pipeline_mode<synchronous>, transform_indices = @transform_2, window_bounds = array<i64: 32, 96>}, {pipeline_mode = #tpu.pipeline_mode<synchronous>, transform_indices = @transform_3, window_bounds = array<i64: 1, 96>}, {pipeline_mode = #tpu.pipeline_mode<synchronous>, transform_indices = @transform_4, window_bounds = array<i64: 32, 32>}, {pipeline_mode = #tpu.pipeline_mode<synchronous>, transform_indices = @transform_5, window_bounds = array<i64: 32, 64>}, {pipeline_mode = #tpu.pipeline_mode<synchronous>, transform_indices = @transform_6, window_bounds = array<i64: 1, 64>}, {pipeline_mode = #tpu.pipeline_mode<synchronous>, transform_indices = @transform_7, window_bounds = array<i64: 64, 32>}, {pipeline_mode = #tpu.pipeline_mode<synchronous>, transform_indices = @transform_8, window_bounds = array<i64: 6, 32>}, {pipeline_mode = #tpu.pipeline_mode<synchronous>, transform_indices = @transform_9, window_bounds = array<i64: 2, 8, 32>}]} {
    %c0 = arith.constant 0 : index
    %c0_0 = arith.constant 0 : index
    %c0_1 = arith.constant 0 : index
    %0 = vector.load %arg1[%c0, %c0_0, %c0_1] : memref<2x8x32xf32, #tpu.memory_space<vmem>>, vector<2x8x32xf32>
    %1 = vector.shape_cast %0 : vector<2x8x32xf32> to vector<16x32xf32>
    %c0_2 = arith.constant 0 : index
    %c0_3 = arith.constant 0 : index
    %2 = vector.load %arg2[%c0_2, %c0_3] : memref<8x8xf32, #tpu.memory_space<vmem>>, vector<8x8xf32>
    %c0_4 = arith.constant 0 : index
    %c0_5 = arith.constant 0 : index
    %3 = vector.load %arg3[%c0_4, %c0_5] : memref<32x96xf32, #tpu.memory_space<vmem>>, vector<32x96xf32>
    %c0_6 = arith.constant 0 : index
    %c0_7 = arith.constant 0 : index
    %4 = vector.load %arg4[%c0_6, %c0_7] : memref<1x96xf32, #tpu.memory_space<vmem>>, vector<1x96xf32>
    %c0_8 = arith.constant 0 : index
    %c0_9 = arith.constant 0 : index
    %5 = vector.load %arg5[%c0_8, %c0_9] : memref<32x32xf32, #tpu.memory_space<vmem>>, vector<32x32xf32>
    %c0_10 = arith.constant 0 : index
    %c0_11 = arith.constant 0 : index
    %6 = vector.load %arg6[%c0_10, %c0_11] : memref<32x64xf32, #tpu.memory_space<vmem>>, vector<32x64xf32>
    %c0_12 = arith.constant 0 : index
    %c0_13 = arith.constant 0 : index
    %7 = vector.load %arg7[%c0_12, %c0_13] : memref<1x64xf32, #tpu.memory_space<vmem>>, vector<1x64xf32>
    %c0_14 = arith.constant 0 : index
    %c0_15 = arith.constant 0 : index
    %8 = vector.load %arg8[%c0_14, %c0_15] : memref<64x32xf32, #tpu.memory_space<vmem>>, vector<64x32xf32>
    %c0_16 = arith.constant 0 : index
    %c0_17 = arith.constant 0 : index
    %9 = vector.load %arg9[%c0_16, %c0_17] : memref<6x32xf32, #tpu.memory_space<vmem>>, vector<6x32xf32>
    %10 = vector.extract_strided_slice %9 {offsets = [0, 0], sizes = [1, 32], strides = [1, 1]} : vector<6x32xf32> to vector<1x32xf32>
    %11 = vector.extract_strided_slice %9 {offsets = [1, 0], sizes = [1, 32], strides = [1, 1]} : vector<6x32xf32> to vector<1x32xf32>
    %12 = vector.extract_strided_slice %9 {offsets = [2, 0], sizes = [1, 32], strides = [1, 1]} : vector<6x32xf32> to vector<1x32xf32>
    %13 = vector.extract_strided_slice %9 {offsets = [3, 0], sizes = [1, 32], strides = [1, 1]} : vector<6x32xf32> to vector<1x32xf32>
    %14 = vector.extract_strided_slice %9 {offsets = [4, 0], sizes = [1, 32], strides = [1, 1]} : vector<6x32xf32> to vector<1x32xf32>
    %15 = vector.extract_strided_slice %9 {offsets = [5, 0], sizes = [1, 32], strides = [1, 1]} : vector<6x32xf32> to vector<1x32xf32>
    %cst = arith.constant dense<0.000000e+00> : vector<16x96xf32>
    %16 = tpu.matmul %1, %3, %cst {dimension_numbers = #tpu.dot_dimension_numbers<[1], [0], [0], [1], [0, 0, 1, 1], [], []>} : vector<16x32xf32>, vector<32x96xf32>, vector<16x96xf32> -> vector<16x96xf32>
    %17 = vector.broadcast %4 : vector<1x96xf32> to vector<16x96xf32>
    %18 = arith.addf %16, %17 : vector<16x96xf32>
    %19 = vector.extract_strided_slice %18 {offsets = [0, 0], sizes = [16, 32], strides = [1, 1]} : vector<16x96xf32> to vector<16x32xf32>
    %20 = vector.shape_cast %19 : vector<16x32xf32> to vector<2x8x32xf32>
    %21 = vector.extract_strided_slice %18 {offsets = [0, 32], sizes = [16, 32], strides = [1, 1]} : vector<16x96xf32> to vector<16x32xf32>
    %22 = vector.shape_cast %21 : vector<16x32xf32> to vector<2x8x32xf32>
    %23 = vector.extract_strided_slice %18 {offsets = [0, 64], sizes = [16, 32], strides = [1, 1]} : vector<16x96xf32> to vector<16x32xf32>
    %24 = vector.shape_cast %23 : vector<16x32xf32> to vector<2x8x32xf32>
    %25 = vector.extract_strided_slice %20 {offsets = [0, 0, 0], sizes = [2, 8, 8], strides = [1, 1, 1]} : vector<2x8x32xf32> to vector<2x8x8xf32>
    %26 = vector.extract_strided_slice %22 {offsets = [0, 0, 0], sizes = [2, 8, 8], strides = [1, 1, 1]} : vector<2x8x32xf32> to vector<2x8x8xf32>
    %27 = vector.extract_strided_slice %24 {offsets = [0, 0, 0], sizes = [2, 8, 8], strides = [1, 1, 1]} : vector<2x8x32xf32> to vector<2x8x8xf32>
    "tpu.trace_start"() <{level = 10 : i32, message = "bqd,bkd->bqk"}> : () -> ()
    %cst_18 = arith.constant dense<0.000000e+00> : vector<2x8x8xf32>
    %28 = tpu.matmul %25, %26, %cst_18 {dimension_numbers = #tpu.dot_dimension_numbers<[2], [2], [1], [1], [0, 0, 0, 1, 1, 1], [0], [0]>} : vector<2x8x8xf32>, vector<2x8x8xf32>, vector<2x8x8xf32> -> vector<2x8x8xf32>
    "tpu.trace_stop"() : () -> ()
    %cst_19 = arith.constant 0.353553385 : f32
    %29 = vector.broadcast %cst_19 : f32 to vector<2x8x8xf32>
    %30 = arith.mulf %28, %29 : vector<2x8x8xf32>
    %31 = vector.shape_cast %2 : vector<8x8xf32> to vector<1x8x8xf32>
    %32 = vector.broadcast %31 : vector<1x8x8xf32> to vector<2x8x8xf32>
    %33 = arith.addf %30, %32 : vector<2x8x8xf32>
    %cst_20 = arith.constant dense<0xFF800000> : vector<2x8xf32>
    %34 = vector.multi_reduction <maximumf>, %33, %cst_20 [2] : vector<2x8x8xf32> to vector<2x8xf32>
    %35 = vector.shape_cast %34 : vector<2x8xf32> to vector<2x8x1xf32>
    %36 = vector.broadcast %35 : vector<2x8x1xf32> to vector<2x8x8xf32>
    %37 = arith.subf %33, %36 : vector<2x8x8xf32>
    %38 = math.exp %37 : vector<2x8x8xf32>
    %cst_21 = arith.constant dense<0.000000e+00> : vector<2x8xf32>
    %39 = vector.multi_reduction <add>, %38, %cst_21 [2] : vector<2x8x8xf32> to vector<2x8xf32>
    %40 = vector.shape_cast %39 : vector<2x8xf32> to vector<2x8x1xf32>
    %41 = tpu.reciprocal %40 {approx = true} : vector<2x8x1xf32> -> vector<2x8x1xf32>
    %42 = vector.broadcast %41 : vector<2x8x1xf32> to vector<2x8x8xf32>
    %43 = arith.mulf %38, %42 : vector<2x8x8xf32>
    "tpu.trace_start"() <{level = 10 : i32, message = "bqk,bkd->bqd"}> : () -> ()
    %cst_22 = arith.constant dense<0.000000e+00> : vector<2x8x8xf32>
    %44 = tpu.matmul %43, %27, %cst_22 {dimension_numbers = #tpu.dot_dimension_numbers<[2], [1], [1], [2], [0, 0, 0, 1, 1, 2], [0], [0]>} : vector<2x8x8xf32>, vector<2x8x8xf32>, vector<2x8x8xf32> -> vector<2x8x8xf32>
    "tpu.trace_stop"() : () -> ()
    %45 = vector.extract_strided_slice %20 {offsets = [0, 0, 8], sizes = [2, 8, 8], strides = [1, 1, 1]} : vector<2x8x32xf32> to vector<2x8x8xf32>
    %46 = vector.extract_strided_slice %22 {offsets = [0, 0, 8], sizes = [2, 8, 8], strides = [1, 1, 1]} : vector<2x8x32xf32> to vector<2x8x8xf32>
    %47 = vector.extract_strided_slice %24 {offsets = [0, 0, 8], sizes = [2, 8, 8], strides = [1, 1, 1]} : vector<2x8x32xf32> to vector<2x8x8xf32>
    "tpu.trace_start"() <{level = 10 : i32, message = "bqd,bkd->bqk"}> : () -> ()
    %cst_23 = arith.constant dense<0.000000e+00> : vector<2x8x8xf32>
    %48 = tpu.matmul %45, %46, %cst_23 {dimension_numbers = #tpu.dot_dimension_numbers<[2], [2], [1], [1], [0, 0, 0, 1, 1, 1], [0], [0]>} : vector<2x8x8xf32>, vector<2x8x8xf32>, vector<2x8x8xf32> -> vector<2x8x8xf32>
    "tpu.trace_stop"() : () -> ()
    %cst_24 = arith.constant 0.353553385 : f32
    %49 = vector.broadcast %cst_24 : f32 to vector<2x8x8xf32>
    %50 = arith.mulf %48, %49 : vector<2x8x8xf32>
    %51 = vector.shape_cast %2 : vector<8x8xf32> to vector<1x8x8xf32>
    %52 = vector.broadcast %51 : vector<1x8x8xf32> to vector<2x8x8xf32>
    %53 = arith.addf %50, %52 : vector<2x8x8xf32>
    %cst_25 = arith.constant dense<0xFF800000> : vector<2x8xf32>
    %54 = vector.multi_reduction <maximumf>, %53, %cst_25 [2] : vector<2x8x8xf32> to vector<2x8xf32>
    %55 = vector.shape_cast %54 : vector<2x8xf32> to vector<2x8x1xf32>
    %56 = vector.broadcast %55 : vector<2x8x1xf32> to vector<2x8x8xf32>
    %57 = arith.subf %53, %56 : vector<2x8x8xf32>
    %58 = math.exp %57 : vector<2x8x8xf32>
    %cst_26 = arith.constant dense<0.000000e+00> : vector<2x8xf32>
    %59 = vector.multi_reduction <add>, %58, %cst_26 [2] : vector<2x8x8xf32> to vector<2x8xf32>
    %60 = vector.shape_cast %59 : vector<2x8xf32> to vector<2x8x1xf32>
    %61 = tpu.reciprocal %60 {approx = true} : vector<2x8x1xf32> -> vector<2x8x1xf32>
    %62 = vector.broadcast %61 : vector<2x8x1xf32> to vector<2x8x8xf32>
    %63 = arith.mulf %58, %62 : vector<2x8x8xf32>
    "tpu.trace_start"() <{level = 10 : i32, message = "bqk,bkd->bqd"}> : () -> ()
    %cst_27 = arith.constant dense<0.000000e+00> : vector<2x8x8xf32>
    %64 = tpu.matmul %63, %47, %cst_27 {dimension_numbers = #tpu.dot_dimension_numbers<[2], [1], [1], [2], [0, 0, 0, 1, 1, 2], [0], [0]>} : vector<2x8x8xf32>, vector<2x8x8xf32>, vector<2x8x8xf32> -> vector<2x8x8xf32>
    "tpu.trace_stop"() : () -> ()
    %65 = vector.extract_strided_slice %20 {offsets = [0, 0, 16], sizes = [2, 8, 8], strides = [1, 1, 1]} : vector<2x8x32xf32> to vector<2x8x8xf32>
    %66 = vector.extract_strided_slice %22 {offsets = [0, 0, 16], sizes = [2, 8, 8], strides = [1, 1, 1]} : vector<2x8x32xf32> to vector<2x8x8xf32>
    %67 = vector.extract_strided_slice %24 {offsets = [0, 0, 16], sizes = [2, 8, 8], strides = [1, 1, 1]} : vector<2x8x32xf32> to vector<2x8x8xf32>
    "tpu.trace_start"() <{level = 10 : i32, message = "bqd,bkd->bqk"}> : () -> ()
    %cst_28 = arith.constant dense<0.000000e+00> : vector<2x8x8xf32>
    %68 = tpu.matmul %65, %66, %cst_28 {dimension_numbers = #tpu.dot_dimension_numbers<[2], [2], [1], [1], [0, 0, 0, 1, 1, 1], [0], [0]>} : vector<2x8x8xf32>, vector<2x8x8xf32>, vector<2x8x8xf32> -> vector<2x8x8xf32>
    "tpu.trace_stop"() : () -> ()
    %cst_29 = arith.constant 0.353553385 : f32
    %69 = vector.broadcast %cst_29 : f32 to vector<2x8x8xf32>
    %70 = arith.mulf %68, %69 : vector<2x8x8xf32>
    %71 = vector.shape_cast %2 : vector<8x8xf32> to vector<1x8x8xf32>
    %72 = vector.broadcast %71 : vector<1x8x8xf32> to vector<2x8x8xf32>
    %73 = arith.addf %70, %72 : vector<2x8x8xf32>
    %cst_30 = arith.constant dense<0xFF800000> : vector<2x8xf32>
    %74 = vector.multi_reduction <maximumf>, %73, %cst_30 [2] : vector<2x8x8xf32> to vector<2x8xf32>
    %75 = vector.shape_cast %74 : vector<2x8xf32> to vector<2x8x1xf32>
    %76 = vector.broadcast %75 : vector<2x8x1xf32> to vector<2x8x8xf32>
    %77 = arith.subf %73, %76 : vector<2x8x8xf32>
    %78 = math.exp %77 : vector<2x8x8xf32>
    %cst_31 = arith.constant dense<0.000000e+00> : vector<2x8xf32>
    %79 = vector.multi_reduction <add>, %78, %cst_31 [2] : vector<2x8x8xf32> to vector<2x8xf32>
    %80 = vector.shape_cast %79 : vector<2x8xf32> to vector<2x8x1xf32>
    %81 = tpu.reciprocal %80 {approx = true} : vector<2x8x1xf32> -> vector<2x8x1xf32>
    %82 = vector.broadcast %81 : vector<2x8x1xf32> to vector<2x8x8xf32>
    %83 = arith.mulf %78, %82 : vector<2x8x8xf32>
    "tpu.trace_start"() <{level = 10 : i32, message = "bqk,bkd->bqd"}> : () -> ()
    %cst_32 = arith.constant dense<0.000000e+00> : vector<2x8x8xf32>
    %84 = tpu.matmul %83, %67, %cst_32 {dimension_numbers = #tpu.dot_dimension_numbers<[2], [1], [1], [2], [0, 0, 0, 1, 1, 2], [0], [0]>} : vector<2x8x8xf32>, vector<2x8x8xf32>, vector<2x8x8xf32> -> vector<2x8x8xf32>
    "tpu.trace_stop"() : () -> ()
    %85 = vector.extract_strided_slice %20 {offsets = [0, 0, 24], sizes = [2, 8, 8], strides = [1, 1, 1]} : vector<2x8x32xf32> to vector<2x8x8xf32>
    %86 = vector.extract_strided_slice %22 {offsets = [0, 0, 24], sizes = [2, 8, 8], strides = [1, 1, 1]} : vector<2x8x32xf32> to vector<2x8x8xf32>
    %87 = vector.extract_strided_slice %24 {offsets = [0, 0, 24], sizes = [2, 8, 8], strides = [1, 1, 1]} : vector<2x8x32xf32> to vector<2x8x8xf32>
    "tpu.trace_start"() <{level = 10 : i32, message = "bqd,bkd->bqk"}> : () -> ()
    %cst_33 = arith.constant dense<0.000000e+00> : vector<2x8x8xf32>
    %88 = tpu.matmul %85, %86, %cst_33 {dimension_numbers = #tpu.dot_dimension_numbers<[2], [2], [1], [1], [0, 0, 0, 1, 1, 1], [0], [0]>} : vector<2x8x8xf32>, vector<2x8x8xf32>, vector<2x8x8xf32> -> vector<2x8x8xf32>
    "tpu.trace_stop"() : () -> ()
    %cst_34 = arith.constant 0.353553385 : f32
    %89 = vector.broadcast %cst_34 : f32 to vector<2x8x8xf32>
    %90 = arith.mulf %88, %89 : vector<2x8x8xf32>
    %91 = vector.shape_cast %2 : vector<8x8xf32> to vector<1x8x8xf32>
    %92 = vector.broadcast %91 : vector<1x8x8xf32> to vector<2x8x8xf32>
    %93 = arith.addf %90, %92 : vector<2x8x8xf32>
    %cst_35 = arith.constant dense<0xFF800000> : vector<2x8xf32>
    %94 = vector.multi_reduction <maximumf>, %93, %cst_35 [2] : vector<2x8x8xf32> to vector<2x8xf32>
    %95 = vector.shape_cast %94 : vector<2x8xf32> to vector<2x8x1xf32>
    %96 = vector.broadcast %95 : vector<2x8x1xf32> to vector<2x8x8xf32>
    %97 = arith.subf %93, %96 : vector<2x8x8xf32>
    %98 = math.exp %97 : vector<2x8x8xf32>
    %cst_36 = arith.constant dense<0.000000e+00> : vector<2x8xf32>
    %99 = vector.multi_reduction <add>, %98, %cst_36 [2] : vector<2x8x8xf32> to vector<2x8xf32>
    %100 = vector.shape_cast %99 : vector<2x8xf32> to vector<2x8x1xf32>
    %101 = tpu.reciprocal %100 {approx = true} : vector<2x8x1xf32> -> vector<2x8x1xf32>
    %102 = vector.broadcast %101 : vector<2x8x1xf32> to vector<2x8x8xf32>
    %103 = arith.mulf %98, %102 : vector<2x8x8xf32>
    "tpu.trace_start"() <{level = 10 : i32, message = "bqk,bkd->bqd"}> : () -> ()
    %cst_37 = arith.constant dense<0.000000e+00> : vector<2x8x8xf32>
    %104 = tpu.matmul %103, %87, %cst_37 {dimension_numbers = #tpu.dot_dimension_numbers<[2], [1], [1], [2], [0, 0, 0, 1, 1, 2], [0], [0]>} : vector<2x8x8xf32>, vector<2x8x8xf32>, vector<2x8x8xf32> -> vector<2x8x8xf32>
    "tpu.trace_stop"() : () -> ()
    %105 = tpu.concatenate %44, %64, %84, %104 in 2 : vector<2x8x8xf32>, vector<2x8x8xf32>, vector<2x8x8xf32>, vector<2x8x8xf32> -> vector<2x8x32xf32>
    %106 = vector.shape_cast %105 : vector<2x8x32xf32> to vector<16x32xf32>
    %cst_38 = arith.constant dense<0.000000e+00> : vector<16x32xf32>
    %107 = tpu.matmul %106, %5, %cst_38 {dimension_numbers = #tpu.dot_dimension_numbers<[1], [0], [0], [1], [0, 0, 1, 1], [], []>} : vector<16x32xf32>, vector<32x32xf32>, vector<16x32xf32> -> vector<16x32xf32>
    %108 = vector.broadcast %10 : vector<1x32xf32> to vector<16x32xf32>
    %109 = arith.addf %107, %108 : vector<16x32xf32>
    %110 = arith.addf %1, %109 : vector<16x32xf32>
    %cst_39 = arith.constant dense<0.000000e+00> : vector<16xf32>
    %111 = vector.multi_reduction <add>, %110, %cst_39 [1] : vector<16x32xf32> to vector<16xf32>
    %112 = vector.shape_cast %111 : vector<16xf32> to vector<16x1xf32>
    %cst_40 = arith.constant 3.200000e+01 : f32
    %113 = vector.broadcast %cst_40 : f32 to vector<16x1xf32>
    %114 = arith.divf %112, %113 : vector<16x1xf32>
    %115 = vector.broadcast %114 : vector<16x1xf32> to vector<16x32xf32>
    %116 = arith.subf %110, %115 : vector<16x32xf32>
    %117 = arith.mulf %116, %116 : vector<16x32xf32>
    %cst_41 = arith.constant dense<0.000000e+00> : vector<16xf32>
    %118 = vector.multi_reduction <add>, %117, %cst_41 [1] : vector<16x32xf32> to vector<16xf32>
    %119 = vector.shape_cast %118 : vector<16xf32> to vector<16x1xf32>
    %cst_42 = arith.constant 3.200000e+01 : f32
    %120 = vector.broadcast %cst_42 : f32 to vector<16x1xf32>
    %121 = arith.divf %119, %120 : vector<16x1xf32>
    %122 = vector.broadcast %114 : vector<16x1xf32> to vector<16x32xf32>
    %123 = arith.subf %110, %122 : vector<16x32xf32>
    %cst_43 = arith.constant 9.99999974E-6 : f32
    %124 = vector.broadcast %cst_43 : f32 to vector<16x1xf32>
    %125 = arith.addf %121, %124 : vector<16x1xf32>
    %126 = math.rsqrt %125 : vector<16x1xf32>
    %127 = vector.broadcast %126 : vector<16x1xf32> to vector<16x32xf32>
    %128 = arith.mulf %123, %127 : vector<16x32xf32>
    %129 = vector.broadcast %12 : vector<1x32xf32> to vector<16x32xf32>
    %130 = arith.mulf %128, %129 : vector<16x32xf32>
    %131 = vector.broadcast %13 : vector<1x32xf32> to vector<16x32xf32>
    %132 = arith.addf %130, %131 : vector<16x32xf32>
    %cst_44 = arith.constant dense<0.000000e+00> : vector<16x64xf32>
    %133 = tpu.matmul %132, %6, %cst_44 {dimension_numbers = #tpu.dot_dimension_numbers<[1], [0], [0], [1], [0, 0, 1, 1], [], []>} : vector<16x32xf32>, vector<32x64xf32>, vector<16x64xf32> -> vector<16x64xf32>
    %134 = vector.broadcast %7 : vector<1x64xf32> to vector<16x64xf32>
    %135 = arith.addf %133, %134 : vector<16x64xf32>
    %cst_45 = arith.constant 0.000000e+00 : f32
    %136 = vector.broadcast %cst_45 : f32 to vector<16x64xf32>
    %137 = arith.maximumf %135, %136 : vector<16x64xf32>
    %cst_46 = arith.constant dense<0.000000e+00> : vector<16x32xf32>
    %138 = tpu.matmul %137, %8, %cst_46 {dimension_numbers = #tpu.dot_dimension_numbers<[1], [0], [0], [1], [0, 0, 1, 1], [], []>} : vector<16x64xf32>, vector<64x32xf32>, vector<16x32xf32> -> vector<16x32xf32>
    %139 = vector.broadcast %11 : vector<1x32xf32> to vector<16x32xf32>
    %140 = arith.addf %138, %139 : vector<16x32xf32>
    %141 = arith.addf %132, %140 : vector<16x32xf32>
    %cst_47 = arith.constant dense<0.000000e+00> : vector<16xf32>
    %142 = vector.multi_reduction <add>, %141, %cst_47 [1] : vector<16x32xf32> to vector<16xf32>
    %143 = vector.shape_cast %142 : vector<16xf32> to vector<16x1xf32>
    %cst_48 = arith.constant 3.200000e+01 : f32
    %144 = vector.broadcast %cst_48 : f32 to vector<16x1xf32>
    %145 = arith.divf %143, %144 : vector<16x1xf32>
    %146 = vector.broadcast %145 : vector<16x1xf32> to vector<16x32xf32>
    %147 = arith.subf %141, %146 : vector<16x32xf32>
    %148 = arith.mulf %147, %147 : vector<16x32xf32>
    %cst_49 = arith.constant dense<0.000000e+00> : vector<16xf32>
    %149 = vector.multi_reduction <add>, %148, %cst_49 [1] : vector<16x32xf32> to vector<16xf32>
    %150 = vector.shape_cast %149 : vector<16xf32> to vector<16x1xf32>
    %cst_50 = arith.constant 3.200000e+01 : f32
    %151 = vector.broadcast %cst_50 : f32 to vector<16x1xf32>
    %152 = arith.divf %150, %151 : vector<16x1xf32>
    %153 = vector.broadcast %145 : vector<16x1xf32> to vector<16x32xf32>
    %154 = arith.subf %141, %153 : vector<16x32xf32>
    %cst_51 = arith.constant 9.99999974E-6 : f32
    %155 = vector.broadcast %cst_51 : f32 to vector<16x1xf32>
    %156 = arith.addf %152, %155 : vector<16x1xf32>
    %157 = math.rsqrt %156 : vector<16x1xf32>
    %158 = vector.broadcast %157 : vector<16x1xf32> to vector<16x32xf32>
    %159 = arith.mulf %154, %158 : vector<16x32xf32>
    %160 = vector.broadcast %14 : vector<1x32xf32> to vector<16x32xf32>
    %161 = arith.mulf %159, %160 : vector<16x32xf32>
    %162 = vector.broadcast %15 : vector<1x32xf32> to vector<16x32xf32>
    %163 = arith.addf %161, %162 : vector<16x32xf32>
    %cst_52 = arith.constant dense<0.000000e+00> : vector<16x96xf32>
    %164 = tpu.matmul %163, %3, %cst_52 {dimension_numbers = #tpu.dot_dimension_numbers<[1], [0], [0], [1], [0, 0, 1, 1], [], []>} : vector<16x32xf32>, vector<32x96xf32>, vector<16x96xf32> -> vector<16x96xf32>
    %165 = vector.broadcast %4 : vector<1x96xf32> to vector<16x96xf32>
    %166 = arith.addf %164, %165 : vector<16x96xf32>
    %167 = vector.extract_strided_slice %166 {offsets = [0, 0], sizes = [16, 32], strides = [1, 1]} : vector<16x96xf32> to vector<16x32xf32>
    %168 = vector.shape_cast %167 : vector<16x32xf32> to vector<2x8x32xf32>
    %169 = vector.extract_strided_slice %166 {offsets = [0, 32], sizes = [16, 32], strides = [1, 1]} : vector<16x96xf32> to vector<16x32xf32>
    %170 = vector.shape_cast %169 : vector<16x32xf32> to vector<2x8x32xf32>
    %171 = vector.extract_strided_slice %166 {offsets = [0, 64], sizes = [16, 32], strides = [1, 1]} : vector<16x96xf32> to vector<16x32xf32>
    %172 = vector.shape_cast %171 : vector<16x32xf32> to vector<2x8x32xf32>
    %173 = vector.extract_strided_slice %168 {offsets = [0, 0, 0], sizes = [2, 8, 8], strides = [1, 1, 1]} : vector<2x8x32xf32> to vector<2x8x8xf32>
    %174 = vector.extract_strided_slice %170 {offsets = [0, 0, 0], sizes = [2, 8, 8], strides = [1, 1, 1]} : vector<2x8x32xf32> to vector<2x8x8xf32>
    %175 = vector.extract_strided_slice %172 {offsets = [0, 0, 0], sizes = [2, 8, 8], strides = [1, 1, 1]} : vector<2x8x32xf32> to vector<2x8x8xf32>
    "tpu.trace_start"() <{level = 10 : i32, message = "bqd,bkd->bqk"}> : () -> ()
    %cst_53 = arith.constant dense<0.000000e+00> : vector<2x8x8xf32>
    %176 = tpu.matmul %173, %174, %cst_53 {dimension_numbers = #tpu.dot_dimension_numbers<[2], [2], [1], [1], [0, 0, 0, 1, 1, 1], [0], [0]>} : vector<2x8x8xf32>, vector<2x8x8xf32>, vector<2x8x8xf32> -> vector<2x8x8xf32>
    "tpu.trace_stop"() : () -> ()
    %cst_54 = arith.constant 0.353553385 : f32
    %177 = vector.broadcast %cst_54 : f32 to vector<2x8x8xf32>
    %178 = arith.mulf %176, %177 : vector<2x8x8xf32>
    %179 = vector.shape_cast %2 : vector<8x8xf32> to vector<1x8x8xf32>
    %180 = vector.broadcast %179 : vector<1x8x8xf32> to vector<2x8x8xf32>
    %181 = arith.addf %178, %180 : vector<2x8x8xf32>
    %cst_55 = arith.constant dense<0xFF800000> : vector<2x8xf32>
    %182 = vector.multi_reduction <maximumf>, %181, %cst_55 [2] : vector<2x8x8xf32> to vector<2x8xf32>
    %183 = vector.shape_cast %182 : vector<2x8xf32> to vector<2x8x1xf32>
    %184 = vector.broadcast %183 : vector<2x8x1xf32> to vector<2x8x8xf32>
    %185 = arith.subf %181, %184 : vector<2x8x8xf32>
    %186 = math.exp %185 : vector<2x8x8xf32>
    %cst_56 = arith.constant dense<0.000000e+00> : vector<2x8xf32>
    %187 = vector.multi_reduction <add>, %186, %cst_56 [2] : vector<2x8x8xf32> to vector<2x8xf32>
    %188 = vector.shape_cast %187 : vector<2x8xf32> to vector<2x8x1xf32>
    %189 = tpu.reciprocal %188 {approx = true} : vector<2x8x1xf32> -> vector<2x8x1xf32>
    %190 = vector.broadcast %189 : vector<2x8x1xf32> to vector<2x8x8xf32>
    %191 = arith.mulf %186, %190 : vector<2x8x8xf32>
    "tpu.trace_start"() <{level = 10 : i32, message = "bqk,bkd->bqd"}> : () -> ()
    %cst_57 = arith.constant dense<0.000000e+00> : vector<2x8x8xf32>
    %192 = tpu.matmul %191, %175, %cst_57 {dimension_numbers = #tpu.dot_dimension_numbers<[2], [1], [1], [2], [0, 0, 0, 1, 1, 2], [0], [0]>} : vector<2x8x8xf32>, vector<2x8x8xf32>, vector<2x8x8xf32> -> vector<2x8x8xf32>
    "tpu.trace_stop"() : () -> ()
    %193 = vector.extract_strided_slice %168 {offsets = [0, 0, 8], sizes = [2, 8, 8], strides = [1, 1, 1]} : vector<2x8x32xf32> to vector<2x8x8xf32>
    %194 = vector.extract_strided_slice %170 {offsets = [0, 0, 8], sizes = [2, 8, 8], strides = [1, 1, 1]} : vector<2x8x32xf32> to vector<2x8x8xf32>
    %195 = vector.extract_strided_slice %172 {offsets = [0, 0, 8], sizes = [2, 8, 8], strides = [1, 1, 1]} : vector<2x8x32xf32> to vector<2x8x8xf32>
    "tpu.trace_start"() <{level = 10 : i32, message = "bqd,bkd->bqk"}> : () -> ()
    %cst_58 = arith.constant dense<0.000000e+00> : vector<2x8x8xf32>
    %196 = tpu.matmul %193, %194, %cst_58 {dimension_numbers = #tpu.dot_dimension_numbers<[2], [2], [1], [1], [0, 0, 0, 1, 1, 1], [0], [0]>} : vector<2x8x8xf32>, vector<2x8x8xf32>, vector<2x8x8xf32> -> vector<2x8x8xf32>
    "tpu.trace_stop"() : () -> ()
    %cst_59 = arith.constant 0.353553385 : f32
    %197 = vector.broadcast %cst_59 : f32 to vector<2x8x8xf32>
    %198 = arith.mulf %196, %197 : vector<2x8x8xf32>
    %199 = vector.shape_cast %2 : vector<8x8xf32> to vector<1x8x8xf32>
    %200 = vector.broadcast %199 : vector<1x8x8xf32> to vector<2x8x8xf32>
    %201 = arith.addf %198, %200 : vector<2x8x8xf32>
    %cst_60 = arith.constant dense<0xFF800000> : vector<2x8xf32>
    %202 = vector.multi_reduction <maximumf>, %201, %cst_60 [2] : vector<2x8x8xf32> to vector<2x8xf32>
    %203 = vector.shape_cast %202 : vector<2x8xf32> to vector<2x8x1xf32>
    %204 = vector.broadcast %203 : vector<2x8x1xf32> to vector<2x8x8xf32>
    %205 = arith.subf %201, %204 : vector<2x8x8xf32>
    %206 = math.exp %205 : vector<2x8x8xf32>
    %cst_61 = arith.constant dense<0.000000e+00> : vector<2x8xf32>
    %207 = vector.multi_reduction <add>, %206, %cst_61 [2] : vector<2x8x8xf32> to vector<2x8xf32>
    %208 = vector.shape_cast %207 : vector<2x8xf32> to vector<2x8x1xf32>
    %209 = tpu.reciprocal %208 {approx = true} : vector<2x8x1xf32> -> vector<2x8x1xf32>
    %210 = vector.broadcast %209 : vector<2x8x1xf32> to vector<2x8x8xf32>
    %211 = arith.mulf %206, %210 : vector<2x8x8xf32>
    "tpu.trace_start"() <{level = 10 : i32, message = "bqk,bkd->bqd"}> : () -> ()
    %cst_62 = arith.constant dense<0.000000e+00> : vector<2x8x8xf32>
    %212 = tpu.matmul %211, %195, %cst_62 {dimension_numbers = #tpu.dot_dimension_numbers<[2], [1], [1], [2], [0, 0, 0, 1, 1, 2], [0], [0]>} : vector<2x8x8xf32>, vector<2x8x8xf32>, vector<2x8x8xf32> -> vector<2x8x8xf32>
    "tpu.trace_stop"() : () -> ()
    %213 = vector.extract_strided_slice %168 {offsets = [0, 0, 16], sizes = [2, 8, 8], strides = [1, 1, 1]} : vector<2x8x32xf32> to vector<2x8x8xf32>
    %214 = vector.extract_strided_slice %170 {offsets = [0, 0, 16], sizes = [2, 8, 8], strides = [1, 1, 1]} : vector<2x8x32xf32> to vector<2x8x8xf32>
    %215 = vector.extract_strided_slice %172 {offsets = [0, 0, 16], sizes = [2, 8, 8], strides = [1, 1, 1]} : vector<2x8x32xf32> to vector<2x8x8xf32>
    "tpu.trace_start"() <{level = 10 : i32, message = "bqd,bkd->bqk"}> : () -> ()
    %cst_63 = arith.constant dense<0.000000e+00> : vector<2x8x8xf32>
    %216 = tpu.matmul %213, %214, %cst_63 {dimension_numbers = #tpu.dot_dimension_numbers<[2], [2], [1], [1], [0, 0, 0, 1, 1, 1], [0], [0]>} : vector<2x8x8xf32>, vector<2x8x8xf32>, vector<2x8x8xf32> -> vector<2x8x8xf32>
    "tpu.trace_stop"() : () -> ()
    %cst_64 = arith.constant 0.353553385 : f32
    %217 = vector.broadcast %cst_64 : f32 to vector<2x8x8xf32>
    %218 = arith.mulf %216, %217 : vector<2x8x8xf32>
    %219 = vector.shape_cast %2 : vector<8x8xf32> to vector<1x8x8xf32>
    %220 = vector.broadcast %219 : vector<1x8x8xf32> to vector<2x8x8xf32>
    %221 = arith.addf %218, %220 : vector<2x8x8xf32>
    %cst_65 = arith.constant dense<0xFF800000> : vector<2x8xf32>
    %222 = vector.multi_reduction <maximumf>, %221, %cst_65 [2] : vector<2x8x8xf32> to vector<2x8xf32>
    %223 = vector.shape_cast %222 : vector<2x8xf32> to vector<2x8x1xf32>
    %224 = vector.broadcast %223 : vector<2x8x1xf32> to vector<2x8x8xf32>
    %225 = arith.subf %221, %224 : vector<2x8x8xf32>
    %226 = math.exp %225 : vector<2x8x8xf32>
    %cst_66 = arith.constant dense<0.000000e+00> : vector<2x8xf32>
    %227 = vector.multi_reduction <add>, %226, %cst_66 [2] : vector<2x8x8xf32> to vector<2x8xf32>
    %228 = vector.shape_cast %227 : vector<2x8xf32> to vector<2x8x1xf32>
    %229 = tpu.reciprocal %228 {approx = true} : vector<2x8x1xf32> -> vector<2x8x1xf32>
    %230 = vector.broadcast %229 : vector<2x8x1xf32> to vector<2x8x8xf32>
    %231 = arith.mulf %226, %230 : vector<2x8x8xf32>
    "tpu.trace_start"() <{level = 10 : i32, message = "bqk,bkd->bqd"}> : () -> ()
    %cst_67 = arith.constant dense<0.000000e+00> : vector<2x8x8xf32>
    %232 = tpu.matmul %231, %215, %cst_67 {dimension_numbers = #tpu.dot_dimension_numbers<[2], [1], [1], [2], [0, 0, 0, 1, 1, 2], [0], [0]>} : vector<2x8x8xf32>, vector<2x8x8xf32>, vector<2x8x8xf32> -> vector<2x8x8xf32>
    "tpu.trace_stop"() : () -> ()
    %233 = vector.extract_strided_slice %168 {offsets = [0, 0, 24], sizes = [2, 8, 8], strides = [1, 1, 1]} : vector<2x8x32xf32> to vector<2x8x8xf32>
    %234 = vector.extract_strided_slice %170 {offsets = [0, 0, 24], sizes = [2, 8, 8], strides = [1, 1, 1]} : vector<2x8x32xf32> to vector<2x8x8xf32>
    %235 = vector.extract_strided_slice %172 {offsets = [0, 0, 24], sizes = [2, 8, 8], strides = [1, 1, 1]} : vector<2x8x32xf32> to vector<2x8x8xf32>
    "tpu.trace_start"() <{level = 10 : i32, message = "bqd,bkd->bqk"}> : () -> ()
    %cst_68 = arith.constant dense<0.000000e+00> : vector<2x8x8xf32>
    %236 = tpu.matmul %233, %234, %cst_68 {dimension_numbers = #tpu.dot_dimension_numbers<[2], [2], [1], [1], [0, 0, 0, 1, 1, 1], [0], [0]>} : vector<2x8x8xf32>, vector<2x8x8xf32>, vector<2x8x8xf32> -> vector<2x8x8xf32>
    "tpu.trace_stop"() : () -> ()
    %cst_69 = arith.constant 0.353553385 : f32
    %237 = vector.broadcast %cst_69 : f32 to vector<2x8x8xf32>
    %238 = arith.mulf %236, %237 : vector<2x8x8xf32>
    %239 = vector.shape_cast %2 : vector<8x8xf32> to vector<1x8x8xf32>
    %240 = vector.broadcast %239 : vector<1x8x8xf32> to vector<2x8x8xf32>
    %241 = arith.addf %238, %240 : vector<2x8x8xf32>
    %cst_70 = arith.constant dense<0xFF800000> : vector<2x8xf32>
    %242 = vector.multi_reduction <maximumf>, %241, %cst_70 [2] : vector<2x8x8xf32> to vector<2x8xf32>
    %243 = vector.shape_cast %242 : vector<2x8xf32> to vector<2x8x1xf32>
    %244 = vector.broadcast %243 : vector<2x8x1xf32> to vector<2x8x8xf32>
    %245 = arith.subf %241, %244 : vector<2x8x8xf32>
    %246 = math.exp %245 : vector<2x8x8xf32>
    %cst_71 = arith.constant dense<0.000000e+00> : vector<2x8xf32>
    %247 = vector.multi_reduction <add>, %246, %cst_71 [2] : vector<2x8x8xf32> to vector<2x8xf32>
    %248 = vector.shape_cast %247 : vector<2x8xf32> to vector<2x8x1xf32>
    %249 = tpu.reciprocal %248 {approx = true} : vector<2x8x1xf32> -> vector<2x8x1xf32>
    %250 = vector.broadcast %249 : vector<2x8x1xf32> to vector<2x8x8xf32>
    %251 = arith.mulf %246, %250 : vector<2x8x8xf32>
    "tpu.trace_start"() <{level = 10 : i32, message = "bqk,bkd->bqd"}> : () -> ()
    %cst_72 = arith.constant dense<0.000000e+00> : vector<2x8x8xf32>
    %252 = tpu.matmul %251, %235, %cst_72 {dimension_numbers = #tpu.dot_dimension_numbers<[2], [1], [1], [2], [0, 0, 0, 1, 1, 2], [0], [0]>} : vector<2x8x8xf32>, vector<2x8x8xf32>, vector<2x8x8xf32> -> vector<2x8x8xf32>
    "tpu.trace_stop"() : () -> ()
    %253 = tpu.concatenate %192, %212, %232, %252 in 2 : vector<2x8x8xf32>, vector<2x8x8xf32>, vector<2x8x8xf32>, vector<2x8x8xf32> -> vector<2x8x32xf32>
    %254 = vector.shape_cast %253 : vector<2x8x32xf32> to vector<16x32xf32>
    %cst_73 = arith.constant dense<0.000000e+00> : vector<16x32xf32>
    %255 = tpu.matmul %254, %5, %cst_73 {dimension_numbers = #tpu.dot_dimension_numbers<[1], [0], [0], [1], [0, 0, 1, 1], [], []>} : vector<16x32xf32>, vector<32x32xf32>, vector<16x32xf32> -> vector<16x32xf32>
    %256 = vector.broadcast %10 : vector<1x32xf32> to vector<16x32xf32>
    %257 = arith.addf %255, %256 : vector<16x32xf32>
    %258 = arith.addf %163, %257 : vector<16x32xf32>
    %cst_74 = arith.constant dense<0.000000e+00> : vector<16xf32>
    %259 = vector.multi_reduction <add>, %258, %cst_74 [1] : vector<16x32xf32> to vector<16xf32>
    %260 = vector.shape_cast %259 : vector<16xf32> to vector<16x1xf32>
    %cst_75 = arith.constant 3.200000e+01 : f32
    %261 = vector.broadcast %cst_75 : f32 to vector<16x1xf32>
    %262 = arith.divf %260, %261 : vector<16x1xf32>
    %263 = vector.broadcast %262 : vector<16x1xf32> to vector<16x32xf32>
    %264 = arith.subf %258, %263 : vector<16x32xf32>
    %265 = arith.mulf %264, %264 : vector<16x32xf32>
    %cst_76 = arith.constant dense<0.000000e+00> : vector<16xf32>
    %266 = vector.multi_reduction <add>, %265, %cst_76 [1] : vector<16x32xf32> to vector<16xf32>
    %267 = vector.shape_cast %266 : vector<16xf32> to vector<16x1xf32>
    %cst_77 = arith.constant 3.200000e+01 : f32
    %268 = vector.broadcast %cst_77 : f32 to vector<16x1xf32>
    %269 = arith.divf %267, %268 : vector<16x1xf32>
    %270 = vector.broadcast %262 : vector<16x1xf32> to vector<16x32xf32>
    %271 = arith.subf %258, %270 : vector<16x32xf32>
    %cst_78 = arith.constant 9.99999974E-6 : f32
    %272 = vector.broadcast %cst_78 : f32 to vector<16x1xf32>
    %273 = arith.addf %269, %272 : vector<16x1xf32>
    %274 = math.rsqrt %273 : vector<16x1xf32>
    %275 = vector.broadcast %274 : vector<16x1xf32> to vector<16x32xf32>
    %276 = arith.mulf %271, %275 : vector<16x32xf32>
    %277 = vector.broadcast %12 : vector<1x32xf32> to vector<16x32xf32>
    %278 = arith.mulf %276, %277 : vector<16x32xf32>
    %279 = vector.broadcast %13 : vector<1x32xf32> to vector<16x32xf32>
    %280 = arith.addf %278, %279 : vector<16x32xf32>
    %cst_79 = arith.constant dense<0.000000e+00> : vector<16x64xf32>
    %281 = tpu.matmul %280, %6, %cst_79 {dimension_numbers = #tpu.dot_dimension_numbers<[1], [0], [0], [1], [0, 0, 1, 1], [], []>} : vector<16x32xf32>, vector<32x64xf32>, vector<16x64xf32> -> vector<16x64xf32>
    %282 = vector.broadcast %7 : vector<1x64xf32> to vector<16x64xf32>
    %283 = arith.addf %281, %282 : vector<16x64xf32>
    %cst_80 = arith.constant 0.000000e+00 : f32
    %284 = vector.broadcast %cst_80 : f32 to vector<16x64xf32>
    %285 = arith.maximumf %283, %284 : vector<16x64xf32>
    %cst_81 = arith.constant dense<0.000000e+00> : vector<16x32xf32>
    %286 = tpu.matmul %285, %8, %cst_81 {dimension_numbers = #tpu.dot_dimension_numbers<[1], [0], [0], [1], [0, 0, 1, 1], [], []>} : vector<16x64xf32>, vector<64x32xf32>, vector<16x32xf32> -> vector<16x32xf32>
    %287 = vector.broadcast %11 : vector<1x32xf32> to vector<16x32xf32>
    %288 = arith.addf %286, %287 : vector<16x32xf32>
    %289 = arith.addf %280, %288 : vector<16x32xf32>
    %cst_82 = arith.constant dense<0.000000e+00> : vector<16xf32>
    %290 = vector.multi_reduction <add>, %289, %cst_82 [1] : vector<16x32xf32> to vector<16xf32>
    %291 = vector.shape_cast %290 : vector<16xf32> to vector<16x1xf32>
    %cst_83 = arith.constant 3.200000e+01 : f32
    %292 = vector.broadcast %cst_83 : f32 to vector<16x1xf32>
    %293 = arith.divf %291, %292 : vector<16x1xf32>
    %294 = vector.broadcast %293 : vector<16x1xf32> to vector<16x32xf32>
    %295 = arith.subf %289, %294 : vector<16x32xf32>
    %296 = arith.mulf %295, %295 : vector<16x32xf32>
    %cst_84 = arith.constant dense<0.000000e+00> : vector<16xf32>
    %297 = vector.multi_reduction <add>, %296, %cst_84 [1] : vector<16x32xf32> to vector<16xf32>
    %298 = vector.shape_cast %297 : vector<16xf32> to vector<16x1xf32>
    %cst_85 = arith.constant 3.200000e+01 : f32
    %299 = vector.broadcast %cst_85 : f32 to vector<16x1xf32>
    %300 = arith.divf %298, %299 : vector<16x1xf32>
    %301 = vector.broadcast %293 : vector<16x1xf32> to vector<16x32xf32>
    %302 = arith.subf %289, %301 : vector<16x32xf32>
    %cst_86 = arith.constant 9.99999974E-6 : f32
    %303 = vector.broadcast %cst_86 : f32 to vector<16x1xf32>
    %304 = arith.addf %300, %303 : vector<16x1xf32>
    %305 = math.rsqrt %304 : vector<16x1xf32>
    %306 = vector.broadcast %305 : vector<16x1xf32> to vector<16x32xf32>
    %307 = arith.mulf %302, %306 : vector<16x32xf32>
    %308 = vector.broadcast %14 : vector<1x32xf32> to vector<16x32xf32>
    %309 = arith.mulf %307, %308 : vector<16x32xf32>
    %310 = vector.broadcast %15 : vector<1x32xf32> to vector<16x32xf32>
    %311 = arith.addf %309, %310 : vector<16x32xf32>
    %312 = vector.shape_cast %311 : vector<16x32xf32> to vector<2x8x32xf32>
    %c0_87 = arith.constant 0 : index
    %c0_88 = arith.constant 0 : index
    %c0_89 = arith.constant 0 : index
    %313 = vector.load %arg10[%c0_87, %c0_88, %c0_89] : memref<2x8x32xf32, #tpu.memory_space<vmem>>, vector<2x8x32xf32>
    tpu.vector_store %arg10[%c0_87, %c0_88, %c0_89], %312 {strides = array<i32>} : memref<2x8x32xf32, #tpu.memory_space<vmem>>, vector<2x8x32xf32>,
    return
  }
  func.func @transform_0(%arg0: i32) -> (i32, i32, i32) {
    %c0_i32 = arith.constant 0 : i32
    %c0_i32_0 = arith.constant 0 : i32
    %c0_i32_1 = arith.constant 0 : i32
    %c0_i32_2 = arith.constant 0 : i32
    return %c0_i32, %c0_i32_0, %c0_i32_1 : i32, i32, i32
  }
  func.func @transform_1(%arg0: i32) -> (i32, i32) {
    %c0_i32 = arith.constant 0 : i32
    %c0_i32_0 = arith.constant 0 : i32
    %c0_i32_1 = arith.constant 0 : i32
    return %c0_i32, %c0_i32_0 : i32, i32
  }
  func.func @transform_2(%arg0: i32) -> (i32, i32) {
    %c0_i32 = arith.constant 0 : i32
    %c0_i32_0 = arith.constant 0 : i32
    %c0_i32_1 = arith.constant 0 : i32
    return %c0_i32, %c0_i32_0 : i32, i32
  }
  func.func @transform_3(%arg0: i32) -> (i32, i32) {
    %c0_i32 = arith.constant 0 : i32
    %c0_i32_0 = arith.constant 0 : i32
    %c0_i32_1 = arith.constant 0 : i32
    return %c0_i32, %c0_i32_0 : i32, i32
  }
  func.func @transform_4(%arg0: i32) -> (i32, i32) {
    %c0_i32 = arith.constant 0 : i32
    %c0_i32_0 = arith.constant 0 : i32
    %c0_i32_1 = arith.constant 0 : i32
    return %c0_i32, %c0_i32_0 : i32, i32
  }
  func.func @transform_5(%arg0: i32) -> (i32, i32) {
    %c0_i32 = arith.constant 0 : i32
    %c0_i32_0 = arith.constant 0 : i32
    %c0_i32_1 = arith.constant 0 : i32
    return %c0_i32, %c0_i32_0 : i32, i32
  }
  func.func @transform_6(%arg0: i32) -> (i32, i32) {
    %c0_i32 = arith.constant 0 : i32
    %c0_i32_0 = arith.constant 0 : i32
    %c0_i32_1 = arith.constant 0 : i32
    return %c0_i32, %c0_i32_0 : i32, i32
  }
  func.func @transform_7(%arg0: i32) -> (i32, i32) {
    %c0_i32 = arith.constant 0 : i32
    %c0_i32_0 = arith.constant 0 : i32
    %c0_i32_1 = arith.constant 0 : i32
    return %c0_i32, %c0_i32_0 : i32, i32
  }
  func.func @transform_8(%arg0: i32) -> (i32, i32) {
    %c0_i32 = arith.constant 0 : i32
    %c0_i32_0 = arith.constant 0 : i32
    %c0_i32_1 = arith.constant 0 : i32
    return %c0_i32, %c0_i32_0 : i32, i32
  }
  func.func @transform_9(%arg0: i32) -> (i32, i32, i32) {
    %c0_i32 = arith.constant 0 : i32
    %c0_i32_0 = arith.constant 0 : i32
    %c0_i32_1 = arith.constant 0 : i32
    %c0_i32_2 = arith.constant 0 : i32
    return %c0_i32, %c0_i32_0, %c0_i32_1 : i32, i32, i32
  }
}

</mosaic_0001>

<bundles_post_ra>
// kernel: transformer_encoder.1
= control target key start
LH: loop header
LB: loop body
LE: loop exit
PB: predicated region body
PF: predicated region fallthrough
CT: control target
= control target key end

     0   :  { %vm64_vm0 = vcmask 261120   ;;  %v4241_v8 = vmov 0.0   ;;  %vm4242_vm1 = vmmov 0   ;;  %vm149_vm2 = vcmask 64512   ;;  %s4244_s23 = smov 64   ;;  %s4245_s24 = smov 88   ;;  %s4912_s2 = inlined_call_operand.vmem [shape: f32[32,96], index: 2, kind: input, shape index: {}]   ;;  %s4913_s0 = inlined_call_operand.vmem [shape: f32[2,8,32], index: 0, kind: input, shape index: {}]   ;;  %s4914_s3 = inlined_call_operand.vmem [shape: f32[1,96], index: 3, kind: input, shape index: {}]   ;;  %s4915_s1 = inlined_call_operand.vmem [shape: f32[8,8], index: 1, kind: input, shape index: {}]   ;;  %s4916_s4 = inlined_call_operand.vmem [shape: f32[32,32], index: 4, kind: input, shape index: {}]   ;;  %s4917_s8 = inlined_call_operand.vmem [shape: f32[6,32], index: 8, kind: input, shape index: {}]   ;;  %s4918_s5 = inlined_call_operand.vmem [shape: f32[32,64], index: 5, kind: input, shape index: {}]   ;;  %s4919_s7 = inlined_call_operand.vmem [shape: f32[64,32], index: 7, kind: input, shape index: {}]   ;;  %s4920_s6 = inlined_call_operand.vmem [shape: f32[1,64], index: 6, kind: input, shape index: {}]   ;;  %s4921_s9 = inlined_call_operand.vmem [shape: f32[2,8,32], index: 9, kind: output, shape index: {}]  }
   0x1   :  { %v35_v0 = vld [vmem:[%s4912_s2] sm:$0xff]  ;;  %v36_v1 = vld [vmem:[%s4912_s2 + $0x8] sm:$0xff]  ;;  %v37_v2 = vld [vmem:[%s4912_s2 + $0x10] sm:$0xff]  ;;  %3821 = vmatprep.subr.mxu0 %v4241_v8  ;;  %3823 = vmatprep.mubr.msk.f32.mxu0 %vm4242_vm1, %v4241_v8  ;;  %s4246_s25 = smov 120   ;;  %s4247_s26 = smov 56   ;;  %vm1510_vm3 = vcmask 195584  }
   0x2   :  { %v4316_v3 = vpack.c.bf16 %v36_v1, %v35_v0  ;;  %v38_v4 = vld [vmem:[%s4912_s2 + $0x18] sm:$0xff]  ;;  %v4324_v5 = vld [vmem:[%s4913_s0] sm:$0xff]  ;;  %v4337_v7 = vld [vmem:[%s4913_s0 + $0x8] sm:$0xff]  ;;  %s4243_s0 = smov 96   ;;  %s4248_s27 = smov 80   ;;  %vm1507_vm4 = vcmask 130048  }
   0x3   :  { %v4326_v6 = vpack.c.bf16 %v38_v4, %v37_v2  ;;  %3808 = vmatprep.mubr.msk.f32.mxu1 %vm64_vm0, %v4324_v5  ;;  %v4350_v9 = vld [vmem:[%s4914_s3] ss:$0 sm:$0xff]  ;;  %s4249_s28 = smov 112   ;;  %s4250_s29 = smov 48   ;;  %vm1732_vm5 = vcmask 523264  }
   0x4   :  { %4065 = vmatprep.subr.bf16.mxu1 %v4316_v3  ;;  %v4377_v17 = vld [vmem:[%s4915_s1] sm:$0xff]  ;;  %s4251_s30 = smov 72   ;;  %s4252_s10 = smov 104  }
   0x5   :  { %4067 = vmatpush3.bf16.msra.mxu1 %v4316_v3  ;;  %s4253_s11 = smov 40   ;;  %s4254_s12 = smov 8  }
   0x6   :  { %4069 = vmatprep.subr.bf16.mxu1 %v4326_v6  ;;  %s4255_s13 = smov 16   ;;  %s4256_s21 = smov 24  }
   0x9   :  { %4071 = vmatpush3.bf16.msra.mxu1 %v4326_v6 }
   0xa   :  { %3811 = vmatprep.subr.mxu1 %v4241_v8 }
   0xc   :  { %3809 = vmatmul.mubr.msk.f32.vlgmr.msra.gmra.mrb[0].mxu1 %vm64_vm0, %v4337_v7 }
   0xd   :  { %3813 = vmatprep.mubr.msk.f32.mxu1 %vm4242_vm1, %v4241_v8 }
  0xdf   :  { %v3810_v10 = vpop.f32.mrb[0].mxu1 }
  0xe0   :  { %v137_v11 = vpop.f32.mrb[1].mxu1  ;;  %v4358_v13 = vadd.f32 %v3810_v10, %v4350_v9 }
  0xe1   :  { %v4353_v12 = vadd.f32 %v4350_v9, %v137_v11 }
  0xe3   :  { %147 = vrot.lane.b32.xlu0 %v4353_v12, %s4243_s0 }
  0xe7   :  { %225 = vrot.lane.b32.xlu0 %v4358_v13, %s4243_s0 }
 0x155   :  { %v148_v14 = vpop.permute.xlu0 %147 }
 0x156   :  { %3812 = vmatpush3.xpose.msk.msra.mxu1 %vm149_vm2, %v148_v14 }
 0x157   :  { %3816 = vmatprep.subr.mxu1 %v4241_v8 }
 0x159   :  { %3814 = vmatmul.mubr.msk.f32.vlgmr.msra.gmra.mrb[2].mxu1 %vm149_vm2, %v4353_v12  ;;  %v226_v15 = vpop.permute.xlu0 %225 }
 0x15a   :  { %3817 = vmatpush3.xpose.msk.msra.mxu1 %vm149_vm2, %v226_v15  ;;  %3818 = vmatprep.mubr.msk.f32.mxu1 %vm4242_vm1, %v4241_v8 }
 0x15b   :  { %3826 = vmatprep.subr.mxu1 %v4241_v8 }
 0x15d   :  { %3819 = vmatmul.mubr.msk.f32.vlgmr.msra.gmra.mrb[4].mxu1 %vm149_vm2, %v4358_v13 }
 0x15e   :  { %3828 = vmatprep.mubr.msk.f32.mxu1 %vm4242_vm1, %v4241_v8 }
 0x22c   :  { %v220_v16 = vpop.f32.mrb[2].mxu1 }
 0x22d   :  { %v301_v18 = vmul.f32 0.35355338, %v220_v16  ;;  %v3815_v19 = vpop.f32.mrb[3].mxu1 }
 0x22f   :  { %v303_v20 = vadd.f32 %v301_v18, %v4377_v17 }
 0x230   :  { %v297_v21 = vpop.f32.mrb[4].mxu1 }
 0x231   :  { %v302_v22 = vmul.f32 0.35355338, %v297_v21  ;;  %v3820_v23 = vpop.f32.mrb[5].mxu1  ;;  %v305_v24 = vsel %vm149_vm2, %v303_v20, -inf }
 0x232   :  { %306 = vmax.xlane.f32.xlu1 %v305_v24 }
 0x233   :  { %v304_v25 = vadd.f32 %v302_v22, %v4377_v17 }
 0x235   :  { %v308_v26 = vsel %vm149_vm2, %v304_v25, -inf }
 0x236   :  { %309 = vmax.xlane.f32.xlu1 %v308_v26 }
 0x247   :  { %327 = vrot.lane.b32.xlu1 %v4353_v12, %s4244_s23 }
 0x24b   :  { %403 = vrot.lane.b32.xlu1 %v4358_v13, %s4244_s23 }
 0x24f   :  { %481 = vrot.lane.b32.xlu1 %v4353_v12, %s4245_s24 }
 0x253   :  { %559 = vrot.lane.b32.xlu1 %v4358_v13, %s4245_s24 }
 0x2bf   :  { %v307_v27 = vpop.xlane.xlu1 %306 }
 0x2c0   :  { %v311_v28 = vsub.f32 %v303_v20, %v307_v27 }
 0x2c2   :  { %v313_v29 = vmul.f32 1.442695, %v311_v28 }
 0x2c3   :  { %v310_v30 = vpop.xlane.xlu1 %309 }
 0x2c4   :  { %4160 = vpow2.f32 %v313_v29  ;;  %v312_v31 = vsub.f32 %v304_v25, %v310_v30 }
 0x2c6   :  { %v315_v32 = vmul.f32 1.442695, %v312_v31 }
 0x2c7   :  { %v328_v33 = vpop.permute.xlu1 %327 }
 0x2c8   :  { %4162 = vpow2.f32 %v315_v32  ;;  %3822 = vmatpush3.msra.mxu0 %v328_v33 }
 0x2c9   :  { %3831 = vmatprep.subr.mxu0 %v4241_v8 }
 0x2cb   :  { %v404_v34 = vpop.permute.xlu1 %403 }
 0x2cc   :  { %3827 = vmatpush3.msra.mxu1 %v404_v34 }
 0x2cd   :  { %3836 = vmatprep.subr.mxu1 %v4241_v8 }
 0x2ce   :  { %v4161_v35 = vpop.eup %4160 }
 0x2cf   :  { %v317_v36 = vsel %vm149_vm2, %v4161_v35, 0.0  ;;  %v482_v39 = vpop.permute.xlu1 %481 }
 0x2d0   :  { %318 = vadd.xlane.f32.xlu0 %v317_v36 }
 0x2d2   :  { %v4163_v37 = vpop.eup %4162 }
 0x2d3   :  { %v320_v38 = vsel %vm149_vm2, %v4163_v37, 0.0  ;;  %v560_v40 = vpop.permute.xlu1 %559 }
 0x2d4   :  { %321 = vadd.xlane.f32.xlu1 %v320_v38 }
 0x2e5   :  { %557 = vrot.lane.b32.xlu1 %v4358_v13, %s4246_s25 }
 0x2e6   :  { %479 = vrot.lane.b32.xlu0 %v4353_v12, %s4246_s25 }
 0x35d   :  { %v319_v41 = vpop.xlane.xlu0 %318 }
 0x35e   :  { %4164 = vrcp.f32 %v319_v41 }
 0x361   :  { %v322_v42 = vpop.xlane.xlu1 %321  ;;  %v480_v47 = vpop.permute.xlu0 %479 }
 0x362   :  { %4166 = vrcp.f32 %v322_v42 }
 0x365   :  { %v558_v48 = vpop.permute.xlu1 %557 }
 0x368   :  { %v4165_v43 = vpop.eup %4164 }
 0x369   :  { %v325_v44 = vmul.f32 %v4165_v43, %v4161_v35 }
 0x36b   :  { %3824 = vmatmul.mubr.msk.f32.vlgmr.msra.gmra.mrb[0].mxu0 %vm149_vm2, %v325_v44 }
 0x36c   :  { %v4167_v45 = vpop.eup %4166  ;;  %3832 = vmatpush3.xpose.msk.msra.mxu0 %vm149_vm2, %v482_v39  ;;  %3833 = vmatprep.mubr.msk.f32.mxu0 %vm4242_vm1, %v4241_v8 }
 0x36d   :  { %v326_v46 = vmul.f32 %v4167_v45, %v4163_v37  ;;  %3841 = vmatprep.subr.mxu0 %v4241_v8 }
 0x36f   :  { %3829 = vmatmul.mubr.msk.f32.vlgmr.msra.gmra.mrb[6].mxu1 %vm149_vm2, %v326_v46  ;;  %3834 = vmatmul.mubr.msk.f32.vlgmr.msra.gmra.mrb[2].mxu0 %vm149_vm2, %v480_v47 }
 0x370   :  { %3837 = vmatpush3.xpose.msk.msra.mxu1 %vm149_vm2, %v560_v40  ;;  %3838 = vmatprep.mubr.msk.f32.mxu1 %vm4242_vm1, %v4241_v8 }
 0x371   :  { %3846 = vmatprep.subr.mxu1 %v4241_v8  ;;  %3843 = vmatprep.mubr.msk.f32.mxu0 %vm4242_vm1, %v4241_v8 }
 0x373   :  { %3839 = vmatmul.mubr.msk.f32.vlgmr.msra.gmra.mrb[8].mxu1 %vm149_vm2, %v558_v48 }
 0x374   :  { %3848 = vmatprep.mubr.msk.f32.mxu1 %vm4242_vm1, %v4241_v8 }
 0x43e   :  { %v4415_v49 = vpop.f32.mrb[0].mxu0 }
 0x43f   :  { %v3825_v50 = vpop.f32.mrb[1].mxu0 }
 0x442   :  { %v4417_v51 = vpop.f32.mrb[6].mxu1  ;;  %v553_v52 = vpop.f32.mrb[2].mxu0 }
 0x443   :  { %v635_v53 = vmul.f32 0.35355338, %v553_v52  ;;  %v3830_v54 = vpop.f32.mrb[7].mxu1  ;;  %v3835_v55 = vpop.f32.mrb[3].mxu0 }
 0x445   :  { %v637_v56 = vadd.f32 %v635_v53, %v4377_v17 }
 0x446   :  { %v631_v57 = vpop.f32.mrb[8].mxu1 }
 0x447   :  { %v636_v58 = vmul.f32 0.35355338, %v631_v57  ;;  %v3840_v59 = vpop.f32.mrb[9].mxu1  ;;  %v639_v60 = vsel %vm149_vm2, %v637_v56, -inf }
 0x448   :  { %640 = vmax.xlane.f32.xlu1 %v639_v60 }
 0x449   :  { %v638_v61 = vadd.f32 %v636_v58, %v4377_v17 }
 0x44b   :  { %v642_v62 = vsel %vm149_vm2, %v638_v61, -inf }
 0x44c   :  { %643 = vmax.xlane.f32.xlu0 %v642_v62 }
 0x459   :  { %661 = vrot.lane.b32.xlu1 %v4353_v12, %s4247_s26 }
 0x45d   :  { %815 = vrot.lane.b32.xlu1 %v4353_v12, %s4248_s27 }
 0x461   :  { %893 = vrot.lane.b32.xlu1 %v4358_v13, %s4248_s27 }
 0x462   :  { %737 = vrot.lane.b32.xlu0 %v4358_v13, %s4247_s26 }
 0x466   :  { %813 = vrot.lane.b32.xlu0 %v4353_v12, %s4249_s28 }
 0x4d5   :  { %v641_v63 = vpop.xlane.xlu1 %640 }
 0x4d6   :  { %v645_v0 = vsub.f32 %v637_v56, %v641_v63 }
 0x4d8   :  { %v647_v1 = vmul.f32 1.442695, %v645_v0 }
 0x4d9   :  { %v662_v2 = vpop.permute.xlu1 %661  ;;  %v644_v4 = vpop.xlane.xlu0 %643 }
 0x4da   :  { %4168 = vpow2.f32 %v647_v1  ;;  %v646_v10 = vsub.f32 %v638_v61, %v644_v4  ;;  %3842 = vmatpush3.msra.mxu0 %v662_v2 }
 0x4db   :  { %3851 = vmatprep.subr.mxu0 %v4241_v8 }
 0x4dc   :  { %v649_v11 = vmul.f32 1.442695, %v646_v10 }
 0x4dd   :  { %v738_v14 = vpop.permute.xlu0 %737  ;;  %v816_v20 = vpop.permute.xlu1 %815 }
 0x4de   :  { %4170 = vpow2.f32 %v649_v11  ;;  %3847 = vmatpush3.msra.mxu1 %v738_v14 }
 0x4df   :  { %3856 = vmatprep.subr.mxu1 %v4241_v8 }
 0x4e1   :  { %v894_v21 = vpop.permute.xlu1 %893  ;;  %v814_v28 = vpop.permute.xlu0 %813 }
 0x4e4   :  { %v4169_v15 = vpop.eup %4168 }
 0x4e5   :  { %v651_v16 = vsel %vm149_vm2, %v4169_v15, 0.0 }
 0x4e6   :  { %652 = vadd.xlane.f32.xlu1 %v651_v16 }
 0x4e8   :  { %v4171_v18 = vpop.eup %4170 }
 0x4e9   :  { %v654_v19 = vsel %vm149_vm2, %v4171_v18, 0.0 }
 0x4ea   :  { %655 = vadd.xlane.f32.xlu1 %v654_v19 }
 0x4fb   :  { %891 = vrot.lane.b32.xlu1 %v4358_v13, %s4249_s28 }
 0x573   :  { %v653_v22 = vpop.xlane.xlu1 %652 }
 0x574   :  { %4172 = vrcp.f32 %v653_v22 }
 0x577   :  { %v656_v23 = vpop.xlane.xlu1 %655 }
 0x578   :  { %4174 = vrcp.f32 %v656_v23 }
 0x57b   :  { %v892_v29 = vpop.permute.xlu1 %891 }
 0x57e   :  { %v4173_v24 = vpop.eup %4172 }
 0x57f   :  { %v659_v25 = vmul.f32 %v4173_v24, %v4169_v15 }
 0x581   :  { %3844 = vmatmul.mubr.msk.f32.vlgmr.msra.gmra.mrb[4].mxu0 %vm149_vm2, %v659_v25 }
 0x582   :  { %v4175_v26 = vpop.eup %4174  ;;  %3852 = vmatpush3.xpose.msk.msra.mxu0 %vm149_vm2, %v816_v20  ;;  %3853 = vmatprep.mubr.msk.f32.mxu0 %vm4242_vm1, %v4241_v8 }
 0x583   :  { %v660_v27 = vmul.f32 %v4175_v26, %v4171_v18  ;;  %3861 = vmatprep.subr.mxu0 %v4241_v8 }
 0x585   :  { %3849 = vmatmul.mubr.msk.f32.vlgmr.msra.gmra.mrb[10].mxu1 %vm149_vm2, %v660_v27  ;;  %3854 = vmatmul.mubr.msk.f32.vlgmr.msra.gmra.mrb[6].mxu0 %vm149_vm2, %v814_v28 }
 0x586   :  { %3857 = vmatpush3.xpose.msk.msra.mxu1 %vm149_vm2, %v894_v21  ;;  %3858 = vmatprep.mubr.msk.f32.mxu1 %vm4242_vm1, %v4241_v8 }
 0x587   :  { %3866 = vmatprep.subr.mxu1 %v4241_v8  ;;  %3863 = vmatprep.mubr.msk.f32.mxu0 %vm4242_vm1, %v4241_v8 }
 0x589   :  { %3859 = vmatmul.mubr.msk.f32.vlgmr.msra.gmra.mrb[12].mxu1 %vm149_vm2, %v892_v29 }
 0x58a   :  { %3868 = vmatprep.mubr.msk.f32.mxu1 %vm4242_vm1, %v4241_v8 }
 0x654   :  { %v4455_v30 = vpop.f32.mrb[4].mxu0 }
 0x655   :  { %v3845_v31 = vpop.f32.mrb[5].mxu0 }
 0x658   :  { %v4457_v32 = vpop.f32.mrb[10].mxu1  ;;  %v887_v33 = vpop.f32.mrb[6].mxu0 }
 0x659   :  { %v969_v34 = vmul.f32 0.35355338, %v887_v33  ;;  %v3850_v35 = vpop.f32.mrb[11].mxu1  ;;  %v3855_v36 = vpop.f32.mrb[7].mxu0 }
 0x65b   :  { %v971_v37 = vadd.f32 %v969_v34, %v4377_v17 }
 0x65c   :  { %v965_v38 = vpop.f32.mrb[12].mxu1 }
 0x65d   :  { %v970_v39 = vmul.f32 0.35355338, %v965_v38  ;;  %v3860_v40 = vpop.f32.mrb[13].mxu1  ;;  %v973_v41 = vsel %vm149_vm2, %v971_v37, -inf }
 0x65e   :  { %974 = vmax.xlane.f32.xlu0 %v973_v41 }
 0x65f   :  { %v972_v42 = vadd.f32 %v970_v39, %v4377_v17 }
 0x661   :  { %v976_v43 = vsel %vm149_vm2, %v972_v42, -inf }
 0x662   :  { %977 = vmax.xlane.f32.xlu1 %v976_v43 }
 0x673   :  { %995 = vrot.lane.b32.xlu1 %v4353_v12, %s4250_s29 }
 0x674   :  { %1071 = vrot.lane.b32.xlu0 %v4358_v13, %s4250_s29 }
 0x677   :  { %1149 = vrot.lane.b32.xlu1 %v4353_v12, %s4251_s30 }
 0x67b   :  { %1227 = vrot.lane.b32.xlu1 %v4358_v13, %s4251_s30 }
 0x67f   :  { %1225 = vrot.lane.b32.xlu1 %v4358_v13, %s4252_s10 }
 0x6eb   :  { %v975_v44 = vpop.xlane.xlu0 %974 }
 0x6ec   :  { %v979_v45 = vsub.f32 %v971_v37, %v975_v44  ;;  %v41_v44 = vld [vmem:[%s4916_s4 + $0x8] sm:$0xff] }
 0x6ee   :  { %v981_v46 = vmul.f32 1.442695, %v979_v45 }
 0x6ef   :  { %v978_v47 = vpop.xlane.xlu1 %977  ;;  %v1072_v48 = vpop.permute.xlu0 %1071 }
 0x6f0   :  { %4176 = vpow2.f32 %v981_v46  ;;  %v980_v50 = vsub.f32 %v972_v42, %v978_v47  ;;  %3867 = vmatpush3.msra.mxu1 %v1072_v48  ;;  %v42_v46 = vld [vmem:[%s4916_s4 + $0x10] sm:$0xff]  ;;  %v43_v47 = vld [vmem:[%s4916_s4 + $0x18] sm:$0xff] }
 0x6f1   :  { %3876 = vmatprep.subr.mxu1 %v4241_v8  ;;  %v4529_v48 = vpack.c.bf16 %v43_v47, %v42_v46 }
 0x6f2   :  { %v983_v52 = vmul.f32 1.442695, %v980_v50 }
 0x6f3   :  { %v996_v53 = vpop.permute.xlu1 %995 }
 0x6f4   :  { %4178 = vpow2.f32 %v983_v52  ;;  %3862 = vmatpush3.msra.mxu0 %v996_v53 }
 0x6f5   :  { %3871 = vmatprep.subr.mxu0 %v4241_v8 }
 0x6f7   :  { %v1150_v60 = vpop.permute.xlu1 %1149 }
 0x6fa   :  { %v4177_v54 = vpop.eup %4176 }
 0x6fb   :  { %v985_v55 = vsel %vm149_vm2, %v4177_v54, 0.0  ;;  %v1228_v0 = vpop.permute.xlu1 %1227 }
 0x6fc   :  { %986 = vadd.xlane.f32.xlu0 %v985_v55 }
 0x6fe   :  { %v4179_v56 = vpop.eup %4178 }
 0x6ff   :  { %v988_v57 = vsel %vm149_vm2, %v4179_v56, 0.0  ;;  %v1226_v4 = vpop.permute.xlu1 %1225 }
 0x700   :  { %989 = vadd.xlane.f32.xlu0 %v988_v57 }
 0x716   :  { %1147 = vrot.lane.b32.xlu0 %v4353_v12, %s4252_s10 }
 0x789   :  { %v987_v58 = vpop.xlane.xlu0 %986 }
 0x78a   :  { %4180 = vrcp.f32 %v987_v58 }
 0x78d   :  { %v990_v59 = vpop.xlane.xlu0 %989 }
 0x78e   :  { %4182 = vrcp.f32 %v990_v59 }
 0x791   :  { %v1148_v2 = vpop.permute.xlu0 %1147 }
 0x794   :  { %v4181_v61 = vpop.eup %4180 }
 0x795   :  { %v993_v62 = vmul.f32 %v4181_v61, %v4177_v54 }
 0x797   :  { %3864 = vmatmul.mubr.msk.f32.vlgmr.msra.gmra.mrb[8].mxu0 %vm149_vm2, %v993_v62 }
 0x798   :  { %v4183_v63 = vpop.eup %4182  ;;  %3872 = vmatpush3.xpose.msk.msra.mxu0 %vm149_vm2, %v1150_v60  ;;  %3873 = vmatprep.mubr.msk.f32.mxu0 %vm4242_vm1, %v4241_v8 }
 0x799   :  { %v994_v1 = vmul.f32 %v4183_v63, %v4179_v56  ;;  %3881 = vmatprep.subr.mxu0 %v4241_v8 }
 0x79b   :  { %3869 = vmatmul.mubr.msk.f32.vlgmr.msra.gmra.mrb[14].mxu1 %vm149_vm2, %v994_v1  ;;  %3874 = vmatmul.mubr.msk.f32.vlgmr.msra.gmra.mrb[10].mxu0 %vm149_vm2, %v1148_v2 }
 0x79c   :  { %3877 = vmatpush3.xpose.msk.msra.mxu1 %vm149_vm2, %v1228_v0  ;;  %3878 = vmatprep.mubr.msk.f32.mxu1 %vm4242_vm1, %v4241_v8 }
 0x79d   :  { %3886 = vmatprep.subr.mxu1 %v4241_v8  ;;  %3883 = vmatprep.mubr.msk.f32.mxu0 %vm4242_vm1, %v4241_v8 }
 0x79f   :  { %3879 = vmatmul.mubr.msk.f32.vlgmr.msra.gmra.mrb[16].mxu1 %vm149_vm2, %v1226_v4 }
 0x7a0   :  { %3888 = vmatprep.mubr.msk.f32.mxu1 %vm4242_vm1, %v4241_v8 }
 0x86a   :  { %v1067_v10 = vpop.f32.mrb[8].mxu0 }
 0x86b   :  { %v3865_v11 = vpop.f32.mrb[9].mxu0 }
 0x86c   :  { %v4551_v11 = vld [vmem:[%s4917_s8] sm:$0x3f] }
 0x86e   :  { %v1143_v14 = vpop.f32.mrb[14].mxu1  ;;  %v1221_v15 = vpop.f32.mrb[10].mxu0 }
 0x86f   :  { %v1303_v16 = vmul.f32 0.35355338, %v1221_v15  ;;  %v3870_v18 = vpop.f32.mrb[15].mxu1  ;;  %v3875_v19 = vpop.f32.mrb[11].mxu0 }
 0x871   :  { %v1305_v20 = vadd.f32 %v1303_v16, %v4377_v17 }
 0x872   :  { %v1299_v21 = vpop.f32.mrb[16].mxu1 }
 0x873   :  { %v1304_v22 = vmul.f32 0.35355338, %v1299_v21  ;;  %v3880_v23 = vpop.f32.mrb[17].mxu1  ;;  %v1307_v24 = vsel %vm149_vm2, %v1305_v20, -inf }
 0x874   :  { %1308 = vmax.xlane.f32.xlu0 %v1307_v24 }
 0x875   :  { %v1306_v25 = vadd.f32 %v1304_v22, %v4377_v17 }
 0x877   :  { %v1310_v26 = vsel %vm149_vm2, %v1306_v25, -inf }
 0x878   :  { %1311 = vmax.xlane.f32.xlu1 %v1310_v26 }
 0x889   :  { %1329 = vrot.lane.b32.xlu1 %v4353_v12, %s4253_s11 }
 0x88d   :  { %1483 = vrot.lane.b32.xlu1 %v4455_v30, %s4254_s12 }
 0x891   :  { %1485 = vrot.lane.b32.xlu1 %v4457_v32, %s4254_s12 }
 0x895   :  { %1493 = vrot.lane.b32.xlu1 %v1143_v14, %s4255_s13 }
 0x901   :  { %v1309_v27 = vpop.xlane.xlu0 %1308 }
 0x902   :  { %v1313_v28 = vsub.f32 %v1305_v20, %v1309_v27 }
 0x904   :  { %v1315_v29 = vmul.f32 1.442695, %v1313_v28 }
 0x905   :  { %v1312_v31 = vpop.xlane.xlu1 %1311 }
 0x906   :  { %4184 = vpow2.f32 %v1315_v29  ;;  %v1314_v33 = vsub.f32 %v1306_v25, %v1312_v31 }
 0x908   :  { %v1317_v34 = vmul.f32 1.442695, %v1314_v33 }
 0x909   :  { %v1330_v35 = vpop.permute.xlu1 %1329 }
 0x90a   :  { %4186 = vpow2.f32 %v1317_v34  ;;  %3882 = vmatpush3.msra.mxu0 %v1330_v35  ;;  %v45_v34 = vld [vmem:[%s4918_s5 + $0x8] sm:$0xff] }
 0x90d   :  { %v1484_v55 = vpop.permute.xlu1 %1483 }
 0x90e   :  { %v1505_v58 = vsel %vm149_vm2, %v4415_v49, %v1484_v55  ;;  %v1513_v49 = vlaneseq }
 0x910   :  { %v4185_v12 = vpop.eup %4184  ;;  %v4545_v4 = vshrl.u32 %v1513_v49, 7  ;;  %v56_v49 = vld [vmem:[%s4919_s7 + $0x38] sm:$0xff] }
 0x911   :  { %v1319_v36 = vsel %vm149_vm2, %v4185_v12, 0.0  ;;  %v1486_v56 = vpop.permute.xlu1 %1485 }
 0x912   :  { %1320 = vadd.xlane.f32.xlu0 %v1319_v36  ;;  %v1506_v63 = vsel %vm149_vm2, %v4417_v51, %v1486_v56  ;;  %v47_v36 = vld [vmem:[%s4918_s5 + $0x18] sm:$0xff]  ;;  %v1635_v55 = vsub.s32 3, %v4545_v4 }
 0x914   :  { %v4187_v30 = vpop.eup %4186 }
 0x915   :  { %v1322_v32 = vsel %vm149_vm2, %v4187_v30, 0.0  ;;  %v1494_v59 = vpop.permute.xlu1 %1493 }
 0x916   :  { %1323 = vadd.xlane.f32.xlu0 %v1322_v32  ;;  %v1509_v0 = vsel %vm1507_vm4, %v1506_v63, %v1494_v59  ;;  %v49_v32 = vld [vmem:[%s4919_s7] sm:$0xff]  ;;  %v4621_v59 = vrot.slane %v4551_v11, %v1635_v55 }
 0x92c   :  { %1405 = vrot.lane.b32.xlu0 %v4358_v13, %s4253_s11  ;;  %v40_v13 = vld [vmem:[%s4916_s4] sm:$0xff] }
 0x92d   :  { %v4519_v45 = vpack.c.bf16 %v41_v44, %v40_v13 }
 0x92f   :  { %4073 = vmatprep.subr.bf16.mxu0 %v4519_v45 }
 0x930   :  { %1491 = vrot.lane.b32.xlu0 %v1067_v10, %s4255_s13  ;;  %v1515_v10 = vsub.s32 0, %v4545_v4 }
 0x932   :  { %v4554_v14 = vrot.slane %v4551_v11, %v1515_v10 }
 0x99f   :  { %v1321_v37 = vpop.xlane.xlu0 %1320 }
 0x9a0   :  { %4188 = vrcp.f32 %v1321_v37  ;;  %v50_v37 = vld [vmem:[%s4919_s7 + $0x8] sm:$0xff] }
 0x9a3   :  { %v1324_v38 = vpop.xlane.xlu0 %1323 }
 0x9a4   :  { %4190 = vrcp.f32 %v1324_v38  ;;  %v51_v38 = vld [vmem:[%s4919_s7 + $0x10] sm:$0xff] }
 0x9a7   :  { %v1406_v39 = vpop.permute.xlu0 %1405 }
 0x9a8   :  { %3887 = vmatpush3.msra.mxu1 %v1406_v39  ;;  %v4594_v39 = vpack.c.bf16 %v50_v37, %v49_v32 }
 0x9aa   :  { %v4189_v40 = vpop.eup %4188 }
 0x9ab   :  { %v1327_v41 = vmul.f32 %v4189_v40, %v4185_v12  ;;  %v1492_v57 = vpop.permute.xlu0 %1491  ;;  %v46_v12 = vld [vmem:[%s4918_s5 + $0x10] sm:$0xff]  ;;  %v52_v40 = vld [vmem:[%s4919_s7 + $0x18] sm:$0xff] }
 0x9ac   :  { %v1508_v60 = vsel %vm1507_vm4, %v1505_v58, %v1492_v57 }
 0x9ad   :  { %3884 = vmatmul.mubr.msk.f32.vlgmr.msra.gmra.mrb[12].mxu0 %vm149_vm2, %v1327_v41  ;;  %v4599_v41 = vpack.c.bf16 %v52_v40, %v51_v38 }
 0x9ae   :  { %v4191_v42 = vpop.eup %4190  ;;  %4075 = vmatpush3.bf16.msra.mxu0 %v4519_v45 }
 0x9af   :  { %v1328_v43 = vmul.f32 %v4191_v42, %v4187_v30  ;;  %4077 = vmatprep.subr.bf16.mxu0 %v4529_v48  ;;  %v4580_v30 = vpack.c.bf16 %v47_v36, %v46_v12  ;;  %v53_v42 = vld [vmem:[%s4919_s7 + $0x20] sm:$0xff] }
 0x9b1   :  { %3889 = vmatmul.mubr.msk.f32.vlgmr.msra.gmra.mrb[18].mxu1 %vm149_vm2, %v1328_v43  ;;  %v54_v43 = vld [vmem:[%s4919_s7 + $0x28] sm:$0xff] }
 0x9b2   :  { %4079 = vmatpush3.bf16.msra.mxu0 %v4529_v48  ;;  %v4610_v13 = vpack.c.bf16 %v54_v43, %v53_v42 }
 0x9b3   :  { %4089 = vmatprep.subr.bf16.mxu0 %v4594_v39 }
 0xa80   :  { %v1401_v50 = vpop.f32.mrb[12].mxu0 }
 0xa81   :  { %1499 = vrot.lane.b32.xlu0 %v1401_v50, %s4256_s21  ;;  %v3885_v52 = vpop.f32.mrb[13].mxu0 }
 0xa84   :  { %v1477_v53 = vpop.f32.mrb[18].mxu1 }
 0xa85   :  { %1501 = vrot.lane.b32.xlu1 %v1477_v53, %s4256_s21  ;;  %v3890_v54 = vpop.f32.mrb[19].mxu1 }
 0xa86   :  { %v1629_v54 = vsub.s32 2, %v4545_v4 }
 0xa88   :  { %v4618_v56 = vrot.slane %v4551_v11, %v1629_v54 }
 0xaf3   :  { %v1500_v61 = vpop.permute.xlu0 %1499 }
 0xaf4   :  { %v1511_v62 = vsel %vm1510_vm3, %v1508_v60, %v1500_v61 }
 0xaf5   :  { %3899 = vmatprep.mubr.msk.f32.mxu0 %vm64_vm0, %v1511_v62 }
 0xaf7   :  { %v1502_v1 = vpop.permute.xlu1 %1501 }
 0xaf8   :  { %v1512_v2 = vsel %vm1510_vm3, %v1509_v0, %v1502_v1 }
 0xaf9   :  { %3900 = vmatmul.mubr.msk.f32.vlgmr.msra.gmra.mrb[14].mxu0 %vm64_vm0, %v1512_v2  ;;  %v55_v2 = vld [vmem:[%s4919_s7 + $0x30] sm:$0xff] }
 0xafa   :  { %4091 = vmatpush3.bf16.msra.mxu0 %v4594_v39  ;;  %v4639_v10 = vpack.c.bf16 %v56_v49, %v55_v2 }
 0xafb   :  { %4093 = vmatprep.subr.bf16.mxu0 %v4599_v41 }
 0xafe   :  { %4095 = vmatpush3.bf16.msra.mxu0 %v4599_v41 }
 0xaff   :  { %4097 = vmatprep.subr.bf16.mxu0 %v4610_v13 }
 0xb02   :  { %4099 = vmatpush3.bf16.msra.mxu0 %v4610_v13 }
 0xb03   :  { %4101 = vmatprep.subr.bf16.mxu0 %v4639_v10 }
 0xb06   :  { %4103 = vmatpush3.bf16.msra.mxu0 %v4639_v10 }
 0xb07   :  { %3953 = vmatprep.subr.mxu0 %v4241_v8 }
 0xbcc   :  { %v3901_v51 = vpop.f32.mrb[14].mxu0 }
 0xbcd   :  { %v1595_v15 = vadd.f32 %v3901_v51, %v4554_v14  ;;  %v1589_v16 = vpop.f32.mrb[15].mxu0 }
 0xbce   :  { %v1590_v18 = vadd.f32 %v1589_v16, %v4554_v14 }
 0xbcf   :  { %v1599_v19 = vadd.f32 %v1595_v15, %v4337_v7 }
 0xbd0   :  { %v1598_v20 = vadd.f32 %v1590_v18, %v4324_v5  ;;  %v44_v5 = vld [vmem:[%s4918_s5] sm:$0xff] }
 0xbd1   :  { %v1603_v21 = vsel %vm64_vm0, %v1599_v19, 0.0  ;;  %v4570_v35 = vpack.c.bf16 %v45_v34, %v44_v5 }
 0xbd2   :  { %1604 = vadd.xlane.f32.xlu1 %v1603_v21  ;;  %v1600_v22 = vsel %vm64_vm0, %v1598_v20, 0.0 }
 0xbd3   :  { %1601 = vadd.xlane.f32.xlu0 %v1600_v22  ;;  %4081 = vmatprep.subr.bf16.mxu1 %v4570_v35 }
 0xbd4   :  { %4083 = vmatpush3.bf16.msra.mxu1 %v4570_v35 }
 0xbd5   :  { %4085 = vmatprep.subr.bf16.mxu1 %v4580_v30 }
 0xbd8   :  { %4087 = vmatpush3.bf16.msra.mxu1 %v4580_v30 }
 0xbd9   :  { %4105 = vmatprep.subr.bf16.mxu1 %v4316_v3 }
 0xc5f   :  { %v1605_v23 = vpop.xlane.xlu1 %1604 }
 0xc60   :  { %v1608_v24 = vmul.f32 0.03125, %v1605_v23  ;;  %v1602_v25 = vpop.xlane.xlu0 %1601 }
 0xc61   :  { %v1607_v26 = vmul.f32 0.03125, %v1602_v25 }
 0xc62   :  { %v1610_v27 = vsub.f32 %v1599_v19, %v1608_v24 }
 0xc63   :  { %v1609_v28 = vsub.f32 %v1598_v20, %v1607_v26  ;;  %v1730_v20 = vsub.s32 1, %v4545_v4 }
 0xc64   :  { %v1612_v33 = vmul.f32 %v1610_v27, %v1610_v27 }
 0xc65   :  { %v1611_v29 = vmul.f32 %v1609_v28, %v1609_v28  ;;  %v4657_v21 = vrot.slane %v4551_v11, %v1730_v20 }
 0xc66   :  { %v1616_v7 = vsel %vm64_vm0, %v1612_v33, 0.0 }
 0xc67   :  { %v1613_v31 = vsel %vm64_vm0, %v1611_v29, 0.0 }
 0xc68   :  { %1614 = vadd.xlane.f32.xlu0 %v1613_v31 }
 0xc6c   :  { %1617 = vadd.xlane.f32.xlu0 %v1616_v7 }
 0xcf5   :  { %v1615_v44 = vpop.xlane.xlu0 %1614 }
 0xcf6   :  { %v1619_v46 = vmul.f32 0.03125, %v1615_v44 }
 0xcf8   :  { %v1621_v47 = vadd.f32 1e-05, %v1619_v46 }
 0xcf9   :  { %v1618_v50 = vpop.xlane.xlu0 %1617 }
 0xcfa   :  { %4192 = vrsqrt.f32 %v1621_v47  ;;  %v1620_v52 = vmul.f32 0.03125, %v1618_v50  ;;  %v1844_v50 = vsub.s32 4, %v4545_v4 }
 0xcfc   :  { %v1622_v53 = vadd.f32 1e-05, %v1620_v52  ;;  %v1850_v52 = vsub.s32 5, %v4545_v4 }
 0xcfe   :  { %4194 = vrsqrt.f32 %v1622_v53  ;;  %v4668_v53 = vrot.slane %v4551_v11, %v1844_v50 }
 0xd04   :  { %v4193_v57 = vpop.eup %4192 }
 0xd05   :  { %v1625_v58 = vmul.f32 %v4193_v57, %v1609_v28 }
 0xd07   :  { %v1631_v60 = vmul.f32 %v4618_v56, %v1625_v58 }
 0xd08   :  { %v4195_v61 = vpop.eup %4194 }
 0xd09   :  { %v1626_v62 = vmul.f32 %v4195_v61, %v1610_v27  ;;  %v1637_v63 = vadd.f32 %v4621_v59, %v1631_v60  ;;  %v4671_v60 = vrot.slane %v4551_v11, %v1850_v52 }
 0xd0b   :  { %3910 = vmatprep.mubr.msk.f32.mxu1 %vm64_vm0, %v1637_v63  ;;  %v1632_v0 = vmul.f32 %v4618_v56, %v1626_v62 }
 0xd0d   :  { %v1638_v1 = vadd.f32 %v4621_v59, %v1632_v0 }
 0xd0f   :  { %3911 = vmatmul.mubr.msk.f32.vlgmr.msra.gmra.mrb[20].mxu1 %vm64_vm0, %v1638_v1 }
 0xd10   :  { %4107 = vmatpush3.bf16.msra.mxu1 %v4316_v3  ;;  %v4647_v3 = vld [vmem:[%s4920_s6] ss:$0 sm:$0xff] }
 0xd11   :  { %4109 = vmatprep.subr.bf16.mxu1 %v4326_v6 }
 0xd14   :  { %4111 = vmatpush3.bf16.msra.mxu1 %v4326_v6 }
 0xd15   :  { %3943 = vmatprep.subr.mxu1 %v4241_v8 }
 0xde2   :  { %v3912_v6 = vpop.f32.mrb[20].mxu1 }
 0xde3   :  { %v1723_v51 = vadd.f32 %v3912_v6, %v4647_v3  ;;  %v1717_v15 = vpop.f32.mrb[21].mxu1 }
 0xde4   :  { %v1718_v16 = vadd.f32 %v4647_v3, %v1717_v15 }
 0xde5   :  { %v1727_v19 = vmax.f32 %v1723_v51, 0.0 }
 0xde6   :  { %v1726_v18 = vmax.f32 %v1718_v16, 0.0 }
 0xde8   :  { %3929 = vmatprep.mubr.msk.f32.mxu0 %vm1732_vm5, %v1726_v18 }
 0xde9   :  { %3930 = vmatmul.mubr.msk.f32.vlgmr.msra.gmra.mrb[16].mxu0 %vm1732_vm5, %v1727_v19 }
 0xdea   :  { %3955 = vmatprep.mubr.msk.f32.mxu0 %vm4242_vm1, %v4241_v8 }
 0xebc   :  { %v3931_v22 = vpop.f32.mrb[16].mxu0 }
 0xebd   :  { %v1811_v23 = vadd.f32 %v3931_v22, %v4657_v21  ;;  %v1805_v24 = vpop.f32.mrb[17].mxu0 }
 0xebe   :  { %v1806_v25 = vadd.f32 %v1805_v24, %v4657_v21 }
 0xebf   :  { %v1815_v26 = vadd.f32 %v1811_v23, %v1638_v1 }
 0xec0   :  { %v1814_v27 = vadd.f32 %v1806_v25, %v1637_v63 }
 0xec1   :  { %v1819_v28 = vsel %vm64_vm0, %v1815_v26, 0.0 }
 0xec2   :  { %1820 = vadd.xlane.f32.xlu0 %v1819_v28  ;;  %v1816_v29 = vsel %vm64_vm0, %v1814_v27, 0.0 }
 0xec3   :  { %1817 = vadd.xlane.f32.xlu1 %v1816_v29 }
 0xf4f   :  { %v1821_v31 = vpop.xlane.xlu0 %1820 }
 0xf50   :  { %v1823_v33 = vmul.f32 0.03125, %v1821_v31  ;;  %v1818_v7 = vpop.xlane.xlu1 %1817 }
 0xf51   :  { %v1822_v5 = vmul.f32 0.03125, %v1818_v7 }
 0xf52   :  { %v1825_v34 = vsub.f32 %v1815_v26, %v1823_v33 }
 0xf53   :  { %v1824_v12 = vsub.f32 %v1814_v27, %v1822_v5 }
 0xf54   :  { %v1827_v36 = vmul.f32 %v1825_v34, %v1825_v34 }
 0xf55   :  { %v1826_v32 = vmul.f32 %v1824_v12, %v1824_v12 }
 0xf56   :  { %v1831_v37 = vsel %vm64_vm0, %v1827_v36, 0.0 }
 0xf57   :  { %1832 = vadd.xlane.f32.xlu0 %v1831_v37  ;;  %v1828_v38 = vsel %vm64_vm0, %v1826_v32, 0.0 }
 0xf58   :  { %1829 = vadd.xlane.f32.xlu1 %v1828_v38 }
 0xfe4   :  { %v1833_v40 = vpop.xlane.xlu0 %1832 }
 0xfe5   :  { %v1835_v42 = vmul.f32 0.03125, %v1833_v40  ;;  %v1830_v43 = vpop.xlane.xlu1 %1829 }
 0xfe6   :  { %v1834_v44 = vmul.f32 0.03125, %v1830_v43 }
 0xfe7   :  { %v1837_v46 = vadd.f32 1e-05, %v1835_v42 }
 0xfe8   :  { %v1836_v47 = vadd.f32 1e-05, %v1834_v44 }
 0xfe9   :  { %4196 = vrsqrt.f32 %v1837_v46 }
 0xfea   :  { %4198 = vrsqrt.f32 %v1836_v47 }
 0xff3   :  { %v4197_v54 = vpop.eup %4196 }
 0xff4   :  { %v4199_v55 = vpop.eup %4198  ;;  %v1841_v57 = vmul.f32 %v4197_v54, %v1825_v34 }
 0xff5   :  { %v1840_v58 = vmul.f32 %v4199_v55, %v1824_v12 }
 0xff6   :  { %v1847_v61 = vmul.f32 %v4668_v53, %v1841_v57 }
 0xff7   :  { %v1846_v62 = vmul.f32 %v4668_v53, %v1840_v58 }
 0xff8   :  { %v4679_v0 = vadd.f32 %v4671_v60, %v1847_v61 }
 0xff9   :  { %v4676_v63 = vadd.f32 %v4671_v60, %v1846_v62  ;;  %v4752_v62 = vld [vmem:[%s4915_s1] sm:$0xff] }
 0xffb   :  { %3940 = vmatprep.mubr.msk.f32.mxu1 %vm64_vm0, %v4676_v63 }
 0xffc   :  { %3941 = vmatmul.mubr.msk.f32.vlgmr.msra.gmra.mrb[22].mxu1 %vm64_vm0, %v4679_v0 }
 0xffd   :  { %3945 = vmatprep.mubr.msk.f32.mxu1 %vm4242_vm1, %v4241_v8 }
0x10cf   :  { %v3942_v4 = vpop.f32.mrb[22].mxu1 }
0x10d0   :  { %v4688_v11 = vadd.f32 %v3942_v4, %v4350_v9  ;;  %v1926_v1 = vpop.f32.mrb[23].mxu1 }
0x10d1   :  { %v4691_v2 = vadd.f32 %v4350_v9, %v1926_v1 }
0x10d2   :  { %2013 = vrot.lane.b32.xlu0 %v4688_v11, %s4243_s0 }
0x10d3   :  { %1936 = vrot.lane.b32.xlu1 %v4691_v2, %s4243_s0 }
0x1144   :  { %v2014_v6 = vpop.permute.xlu0 %2013 }
0x1145   :  { %v1937_v49 = vpop.permute.xlu1 %1936 }
0x1146   :  { %3944 = vmatpush3.xpose.msk.msra.mxu1 %vm149_vm2, %v1937_v49 }
0x1147   :  { %3948 = vmatprep.subr.mxu1 %v4241_v8 }
0x1149   :  { %3946 = vmatmul.mubr.msk.f32.vlgmr.msra.gmra.mrb[24].mxu1 %vm149_vm2, %v4691_v2 }
0x114a   :  { %3949 = vmatpush3.xpose.msk.msra.mxu1 %vm149_vm2, %v2014_v6  ;;  %3950 = vmatprep.mubr.msk.f32.mxu1 %vm4242_vm1, %v4241_v8 }
0x114b   :  { %3958 = vmatprep.subr.mxu1 %v4241_v8 }
0x114d   :  { %3951 = vmatmul.mubr.msk.f32.vlgmr.msra.gmra.mrb[26].mxu1 %vm149_vm2, %v4688_v11 }
0x114e   :  { %3960 = vmatprep.mubr.msk.f32.mxu1 %vm4242_vm1, %v4241_v8 }
0x121c   :  { %v2008_v9 = vpop.f32.mrb[24].mxu1 }
0x121d   :  { %v2089_v51 = vmul.f32 0.35355338, %v2008_v9  ;;  %v3947_v15 = vpop.f32.mrb[25].mxu1 }
0x121f   :  { %v2091_v16 = vadd.f32 %v2089_v51, %v4377_v17 }
0x1220   :  { %v2085_v18 = vpop.f32.mrb[26].mxu1 }
0x1221   :  { %v2090_v19 = vmul.f32 0.35355338, %v2085_v18  ;;  %v3952_v20 = vpop.f32.mrb[27].mxu1  ;;  %v2093_v22 = vsel %vm149_vm2, %v2091_v16, -inf }
0x1222   :  { %2094 = vmax.xlane.f32.xlu1 %v2093_v22 }
0x1223   :  { %v2092_v23 = vadd.f32 %v2090_v19, %v4377_v17 }
0x1225   :  { %v2096_v24 = vsel %vm149_vm2, %v2092_v23, -inf }
0x1226   :  { %2097 = vmax.xlane.f32.xlu0 %v2096_v24 }
0x1233   :  { %2115 = vrot.lane.b32.xlu1 %v4691_v2, %s4244_s23 }
0x1237   :  { %2269 = vrot.lane.b32.xlu1 %v4691_v2, %s4245_s24 }
0x123b   :  { %2347 = vrot.lane.b32.xlu1 %v4688_v11, %s4245_s24 }
0x123c   :  { %2191 = vrot.lane.b32.xlu0 %v4688_v11, %s4244_s23 }
0x12af   :  { %v2095_v25 = vpop.xlane.xlu1 %2094 }
0x12b0   :  { %v2099_v26 = vsub.f32 %v2091_v16, %v2095_v25 }
0x12b2   :  { %v2101_v27 = vmul.f32 1.442695, %v2099_v26 }
0x12b3   :  { %v2116_v28 = vpop.permute.xlu1 %2115  ;;  %v2098_v17 = vpop.xlane.xlu0 %2097 }
0x12b4   :  { %4200 = vpow2.f32 %v2101_v27  ;;  %v2100_v29 = vsub.f32 %v2092_v23, %v2098_v17  ;;  %3954 = vmatpush3.msra.mxu0 %v2116_v28 }
0x12b5   :  { %3963 = vmatprep.subr.mxu0 %v4241_v8 }
0x12b6   :  { %v2103_v31 = vmul.f32 1.442695, %v2100_v29 }
0x12b7   :  { %v2192_v33 = vpop.permute.xlu0 %2191  ;;  %v2270_v36 = vpop.permute.xlu1 %2269 }
0x12b8   :  { %4202 = vpow2.f32 %v2103_v31  ;;  %3959 = vmatpush3.msra.mxu1 %v2192_v33 }
0x12b9   :  { %3968 = vmatprep.subr.mxu1 %v4241_v8 }
0x12bb   :  { %v2348_v32 = vpop.permute.xlu1 %2347 }
0x12be   :  { %v4201_v7 = vpop.eup %4200 }
0x12bf   :  { %v2105_v5 = vsel %vm149_vm2, %v4201_v7, 0.0 }
0x12c0   :  { %2106 = vadd.xlane.f32.xlu1 %v2105_v5 }
0x12c2   :  { %v4203_v34 = vpop.eup %4202 }
0x12c3   :  { %v2108_v12 = vsel %vm149_vm2, %v4203_v34, 0.0 }
0x12c4   :  { %2109 = vadd.xlane.f32.xlu0 %v2108_v12 }
0x12d1   :  { %2345 = vrot.lane.b32.xlu1 %v4688_v11, %s4246_s25 }
0x12da   :  { %2267 = vrot.lane.b32.xlu0 %v4691_v2, %s4246_s25 }
0x134d   :  { %v2107_v37 = vpop.xlane.xlu1 %2106 }
0x134e   :  { %4204 = vrcp.f32 %v2107_v37 }
0x1351   :  { %v2110_v38 = vpop.xlane.xlu0 %2109  ;;  %v2346_v47 = vpop.permute.xlu1 %2345 }
0x1352   :  { %4206 = vrcp.f32 %v2110_v38 }
0x1355   :  { %v2268_v46 = vpop.permute.xlu0 %2267 }
0x1358   :  { %v4205_v40 = vpop.eup %4204 }
0x1359   :  { %v2113_v42 = vmul.f32 %v4205_v40, %v4201_v7 }
0x135b   :  { %3956 = vmatmul.mubr.msk.f32.vlgmr.msra.gmra.mrb[18].mxu0 %vm149_vm2, %v2113_v42 }
0x135c   :  { %v4207_v43 = vpop.eup %4206  ;;  %3964 = vmatpush3.xpose.msk.msra.mxu0 %vm149_vm2, %v2270_v36  ;;  %3965 = vmatprep.mubr.msk.f32.mxu0 %vm4242_vm1, %v4241_v8 }
0x135d   :  { %v2114_v44 = vmul.f32 %v4207_v43, %v4203_v34  ;;  %3973 = vmatprep.subr.mxu0 %v4241_v8 }
0x135f   :  { %3961 = vmatmul.mubr.msk.f32.vlgmr.msra.gmra.mrb[28].mxu1 %vm149_vm2, %v2114_v44  ;;  %3966 = vmatmul.mubr.msk.f32.vlgmr.msra.gmra.mrb[20].mxu0 %vm149_vm2, %v2268_v46 }
0x1360   :  { %3969 = vmatpush3.xpose.msk.msra.mxu1 %vm149_vm2, %v2348_v32  ;;  %3970 = vmatprep.mubr.msk.f32.mxu1 %vm4242_vm1, %v4241_v8 }
0x1361   :  { %3978 = vmatprep.subr.mxu1 %v4241_v8  ;;  %3975 = vmatprep.mubr.msk.f32.mxu0 %vm4242_vm1, %v4241_v8 }
0x1363   :  { %3971 = vmatmul.mubr.msk.f32.vlgmr.msra.gmra.mrb[30].mxu1 %vm149_vm2, %v2346_v47 }
0x1364   :  { %3980 = vmatprep.mubr.msk.f32.mxu1 %vm4242_vm1, %v4241_v8 }
0x142e   :  { %v4745_v50 = vpop.f32.mrb[18].mxu0 }
0x142f   :  { %v3957_v52 = vpop.f32.mrb[19].mxu0 }
0x1432   :  { %v4747_v54 = vpop.f32.mrb[28].mxu1  ;;  %v2341_v55 = vpop.f32.mrb[20].mxu0 }
0x1433   :  { %v2423_v57 = vmul.f32 0.35355338, %v2341_v55  ;;  %v3962_v58 = vpop.f32.mrb[29].mxu1  ;;  %v3967_v61 = vpop.f32.mrb[21].mxu0 }
0x1435   :  { %v2425_v4 = vadd.f32 %v4752_v62, %v2423_v57 }
0x1436   :  { %v2419_v1 = vpop.f32.mrb[30].mxu1 }
0x1437   :  { %v2424_v49 = vmul.f32 0.35355338, %v2419_v1  ;;  %v3972_v6 = vpop.f32.mrb[31].mxu1  ;;  %v2427_v9 = vsel %vm149_vm2, %v2425_v4, -inf }
0x1438   :  { %2428 = vmax.xlane.f32.xlu0 %v2427_v9 }
0x1439   :  { %v2426_v51 = vadd.f32 %v4752_v62, %v2424_v49 }
0x143b   :  { %v2430_v15 = vsel %vm149_vm2, %v2426_v51, -inf }
0x143c   :  { %2431 = vmax.xlane.f32.xlu1 %v2430_v15 }
0x144d   :  { %2449 = vrot.lane.b32.xlu1 %v4691_v2, %s4247_s26 }
0x144e   :  { %2525 = vrot.lane.b32.xlu0 %v4688_v11, %s4247_s26 }
0x1451   :  { %2603 = vrot.lane.b32.xlu1 %v4691_v2, %s4248_s27 }
0x1455   :  { %2681 = vrot.lane.b32.xlu1 %v4688_v11, %s4248_s27 }
0x1459   :  { %2679 = vrot.lane.b32.xlu1 %v4688_v11, %s4249_s28 }
0x14c5   :  { %v2429_v16 = vpop.xlane.xlu0 %2428 }
0x14c6   :  { %v2433_v18 = vsub.f32 %v2425_v4, %v2429_v16 }
0x14c8   :  { %v2435_v19 = vmul.f32 1.442695, %v2433_v18 }
0x14c9   :  { %v2526_v20 = vpop.permute.xlu0 %2525  ;;  %v2432_v22 = vpop.xlane.xlu1 %2431 }
0x14ca   :  { %4208 = vpow2.f32 %v2435_v19  ;;  %v2434_v23 = vsub.f32 %v2426_v51, %v2432_v22  ;;  %3979 = vmatpush3.msra.mxu1 %v2526_v20 }
0x14cb   :  { %3988 = vmatprep.subr.mxu1 %v4241_v8 }
0x14cc   :  { %v2437_v24 = vmul.f32 1.442695, %v2434_v23 }
0x14cd   :  { %v2450_v25 = vpop.permute.xlu1 %2449 }
0x14ce   :  { %4210 = vpow2.f32 %v2437_v24  ;;  %3974 = vmatpush3.msra.mxu0 %v2450_v25 }
0x14cf   :  { %3983 = vmatprep.subr.mxu0 %v4241_v8 }
0x14d1   :  { %v2604_v33 = vpop.permute.xlu1 %2603 }
0x14d4   :  { %v4209_v26 = vpop.eup %4208 }
0x14d5   :  { %v2439_v27 = vsel %vm149_vm2, %v4209_v26, 0.0  ;;  %v2682_v12 = vpop.permute.xlu1 %2681 }
0x14d6   :  { %2440 = vadd.xlane.f32.xlu0 %v2439_v27 }
0x14d8   :  { %v4211_v28 = vpop.eup %4210 }
0x14d9   :  { %v2442_v17 = vsel %vm149_vm2, %v4211_v28, 0.0  ;;  %v2680_v37 = vpop.permute.xlu1 %2679 }
0x14da   :  { %2443 = vadd.xlane.f32.xlu0 %v2442_v17 }
0x14f0   :  { %2601 = vrot.lane.b32.xlu0 %v4691_v2, %s4249_s28 }
0x1563   :  { %v2441_v29 = vpop.xlane.xlu0 %2440 }
0x1564   :  { %4212 = vrcp.f32 %v2441_v29 }
0x1567   :  { %v2444_v31 = vpop.xlane.xlu0 %2443 }
0x1568   :  { %4214 = vrcp.f32 %v2444_v31 }
0x156b   :  { %v2602_v32 = vpop.permute.xlu0 %2601 }
0x156e   :  { %v4213_v7 = vpop.eup %4212 }
0x156f   :  { %v2447_v5 = vmul.f32 %v4213_v7, %v4209_v26 }
0x1571   :  { %3976 = vmatmul.mubr.msk.f32.vlgmr.msra.gmra.mrb[22].mxu0 %vm149_vm2, %v2447_v5 }
0x1572   :  { %v4215_v34 = vpop.eup %4214  ;;  %3984 = vmatpush3.xpose.msk.msra.mxu0 %vm149_vm2, %v2604_v33  ;;  %3985 = vmatprep.mubr.msk.f32.mxu0 %vm4242_vm1, %v4241_v8 }
0x1573   :  { %v2448_v36 = vmul.f32 %v4215_v34, %v4211_v28  ;;  %3993 = vmatprep.subr.mxu0 %v4241_v8 }
0x1575   :  { %3981 = vmatmul.mubr.msk.f32.vlgmr.msra.gmra.mrb[32].mxu1 %vm149_vm2, %v2448_v36  ;;  %3986 = vmatmul.mubr.msk.f32.vlgmr.msra.gmra.mrb[24].mxu0 %vm149_vm2, %v2602_v32 }
0x1576   :  { %3989 = vmatpush3.xpose.msk.msra.mxu1 %vm149_vm2, %v2682_v12  ;;  %3990 = vmatprep.mubr.msk.f32.mxu1 %vm4242_vm1, %v4241_v8 }
0x1577   :  { %3998 = vmatprep.subr.mxu1 %v4241_v8  ;;  %3995 = vmatprep.mubr.msk.f32.mxu0 %vm4242_vm1, %v4241_v8 }
0x1579   :  { %3991 = vmatmul.mubr.msk.f32.vlgmr.msra.gmra.mrb[34].mxu1 %vm149_vm2, %v2680_v37 }
0x157a   :  { %4000 = vmatprep.mubr.msk.f32.mxu1 %vm4242_vm1, %v4241_v8 }
0x1644   :  { %v4790_v38 = vpop.f32.mrb[22].mxu0 }
0x1645   :  { %v3977_v40 = vpop.f32.mrb[23].mxu0 }
0x1648   :  { %v4792_v42 = vpop.f32.mrb[32].mxu1  ;;  %v2675_v43 = vpop.f32.mrb[24].mxu0 }
0x1649   :  { %v2757_v44 = vmul.f32 0.35355338, %v2675_v43  ;;  %v3982_v46 = vpop.f32.mrb[33].mxu1  ;;  %v3987_v47 = vpop.f32.mrb[25].mxu0 }
0x164b   :  { %v2759_v52 = vadd.f32 %v4752_v62, %v2757_v44 }
0x164c   :  { %v2753_v55 = vpop.f32.mrb[34].mxu1 }
0x164d   :  { %v2758_v57 = vmul.f32 0.35355338, %v2753_v55  ;;  %v3992_v58 = vpop.f32.mrb[35].mxu1  ;;  %v2761_v61 = vsel %vm149_vm2, %v2759_v52, -inf }
0x164e   :  { %2762 = vmax.xlane.f32.xlu0 %v2761_v61 }
0x164f   :  { %v2760_v4 = vadd.f32 %v4752_v62, %v2758_v57 }
0x1651   :  { %v2764_v1 = vsel %vm149_vm2, %v2760_v4, -inf }
0x1652   :  { %2765 = vmax.xlane.f32.xlu1 %v2764_v1 }
0x1663   :  { %2783 = vrot.lane.b32.xlu1 %v4691_v2, %s4250_s29 }
0x1664   :  { %2859 = vrot.lane.b32.xlu0 %v4688_v11, %s4250_s29 }
0x1667   :  { %2937 = vrot.lane.b32.xlu1 %v4691_v2, %s4251_s30 }
0x166b   :  { %3015 = vrot.lane.b32.xlu1 %v4688_v11, %s4251_s30 }
0x166f   :  { %3013 = vrot.lane.b32.xlu1 %v4688_v11, %s4252_s10 }
0x16db   :  { %v2763_v49 = vpop.xlane.xlu0 %2762 }
0x16dc   :  { %v2767_v6 = vsub.f32 %v2759_v52, %v2763_v49 }
0x16de   :  { %v2769_v9 = vmul.f32 1.442695, %v2767_v6 }
0x16df   :  { %v2860_v51 = vpop.permute.xlu0 %2859  ;;  %v2766_v15 = vpop.xlane.xlu1 %2765 }
0x16e0   :  { %4216 = vpow2.f32 %v2769_v9  ;;  %v2768_v16 = vsub.f32 %v2760_v4, %v2766_v15  ;;  %3999 = vmatpush3.msra.mxu1 %v2860_v51 }
0x16e1   :  { %4008 = vmatprep.subr.mxu1 %v4241_v8 }
0x16e2   :  { %v2771_v18 = vmul.f32 1.442695, %v2768_v16 }
0x16e3   :  { %v2784_v19 = vpop.permute.xlu1 %2783 }
0x16e4   :  { %4218 = vpow2.f32 %v2771_v18  ;;  %3994 = vmatpush3.msra.mxu0 %v2784_v19 }
0x16e5   :  { %4003 = vmatprep.subr.mxu0 %v4241_v8 }
0x16e7   :  { %v2938_v27 = vpop.permute.xlu1 %2937 }
0x16ea   :  { %v4217_v20 = vpop.eup %4216 }
0x16eb   :  { %v2773_v22 = vsel %vm149_vm2, %v4217_v20, 0.0  ;;  %v3016_v31 = vpop.permute.xlu1 %3015 }
0x16ec   :  { %2774 = vadd.xlane.f32.xlu0 %v2773_v22 }
0x16ee   :  { %v4219_v23 = vpop.eup %4218 }
0x16ef   :  { %v2776_v24 = vsel %vm149_vm2, %v4219_v23, 0.0  ;;  %v3014_v5 = vpop.permute.xlu1 %3013 }
0x16f0   :  { %2777 = vadd.xlane.f32.xlu0 %v2776_v24 }
0x1706   :  { %2935 = vrot.lane.b32.xlu0 %v4691_v2, %s4252_s10 }
0x1779   :  { %v2775_v25 = vpop.xlane.xlu0 %2774 }
0x177a   :  { %4220 = vrcp.f32 %v2775_v25 }
0x177d   :  { %v2778_v26 = vpop.xlane.xlu0 %2777 }
0x177e   :  { %4222 = vrcp.f32 %v2778_v26 }
0x1781   :  { %v2936_v7 = vpop.permute.xlu0 %2935 }
0x1784   :  { %v4221_v28 = vpop.eup %4220 }
0x1785   :  { %v2781_v17 = vmul.f32 %v4221_v28, %v4217_v20 }
0x1787   :  { %3996 = vmatmul.mubr.msk.f32.vlgmr.msra.gmra.mrb[26].mxu0 %vm149_vm2, %v2781_v17 }
0x1788   :  { %v4223_v29 = vpop.eup %4222  ;;  %4004 = vmatpush3.xpose.msk.msra.mxu0 %vm149_vm2, %v2938_v27  ;;  %4005 = vmatprep.mubr.msk.f32.mxu0 %vm4242_vm1, %v4241_v8 }
0x1789   :  { %v2782_v33 = vmul.f32 %v4223_v29, %v4219_v23  ;;  %4013 = vmatprep.subr.mxu0 %v4241_v8 }
0x178b   :  { %4001 = vmatmul.mubr.msk.f32.vlgmr.msra.gmra.mrb[36].mxu1 %vm149_vm2, %v2782_v33  ;;  %4006 = vmatmul.mubr.msk.f32.vlgmr.msra.gmra.mrb[28].mxu0 %vm149_vm2, %v2936_v7 }
0x178c   :  { %4009 = vmatpush3.xpose.msk.msra.mxu1 %vm149_vm2, %v3016_v31  ;;  %4010 = vmatprep.mubr.msk.f32.mxu1 %vm4242_vm1, %v4241_v8 }
0x178d   :  { %4018 = vmatprep.subr.mxu1 %v4241_v8  ;;  %4015 = vmatprep.mubr.msk.f32.mxu0 %vm4242_vm1, %v4241_v8 }
0x178f   :  { %4011 = vmatmul.mubr.msk.f32.vlgmr.msra.gmra.mrb[38].mxu1 %vm149_vm2, %v3014_v5 }
0x1790   :  { %4020 = vmatprep.mubr.msk.f32.mxu1 %vm4242_vm1, %v4241_v8 }
0x185a   :  { %v2855_v34 = vpop.f32.mrb[26].mxu0 }
0x185b   :  { %v3997_v12 = vpop.f32.mrb[27].mxu0 }
0x185e   :  { %v2931_v36 = vpop.f32.mrb[36].mxu1  ;;  %v3009_v32 = vpop.f32.mrb[28].mxu0 }
0x185f   :  { %v3091_v37 = vmul.f32 0.35355338, %v3009_v32  ;;  %v4002_v40 = vpop.f32.mrb[37].mxu1  ;;  %v4007_v43 = vpop.f32.mrb[29].mxu0 }
0x1861   :  { %v3093_v44 = vadd.f32 %v4752_v62, %v3091_v37 }
0x1862   :  { %v3087_v46 = vpop.f32.mrb[38].mxu1 }
0x1863   :  { %v3092_v47 = vmul.f32 0.35355338, %v3087_v46  ;;  %v4012_v52 = vpop.f32.mrb[39].mxu1  ;;  %v3095_v55 = vsel %vm149_vm2, %v3093_v44, -inf }
0x1864   :  { %3096 = vmax.xlane.f32.xlu0 %v3095_v55 }
0x1865   :  { %v3094_v57 = vadd.f32 %v4752_v62, %v3092_v47 }
0x1867   :  { %v3098_v58 = vsel %vm149_vm2, %v3094_v57, -inf }
0x1868   :  { %3099 = vmax.xlane.f32.xlu1 %v3098_v58 }
0x1879   :  { %3117 = vrot.lane.b32.xlu1 %v4691_v2, %s4253_s11 }
0x187d   :  { %3271 = vrot.lane.b32.xlu1 %v4790_v38, %s4254_s12 }
0x1881   :  { %3273 = vrot.lane.b32.xlu1 %v4792_v42, %s4254_s12 }
0x1885   :  { %3281 = vrot.lane.b32.xlu1 %v2931_v36, %s4255_s13 }
0x18f1   :  { %v3097_v8 = vpop.xlane.xlu0 %3096 }
0x18f2   :  { %v3101_v61 = vsub.f32 %v3093_v44, %v3097_v8 }
0x18f4   :  { %v3103_v4 = vmul.f32 1.442695, %v3101_v61 }
0x18f5   :  { %v3100_v1 = vpop.xlane.xlu1 %3099 }
0x18f6   :  { %4224 = vpow2.f32 %v3103_v4  ;;  %v3102_v62 = vsub.f32 %v3094_v57, %v3100_v1 }
0x18f8   :  { %v3105_v49 = vmul.f32 1.442695, %v3102_v62 }
0x18f9   :  { %v3118_v6 = vpop.permute.xlu1 %3117 }
0x18fa   :  { %4226 = vpow2.f32 %v3105_v49  ;;  %4014 = vmatpush3.msra.mxu0 %v3118_v6 }
0x18fb   :  { %4113 = vmatprep.subr.bf16.mxu0 %v4519_v45 }
0x18fd   :  { %v3272_v25 = vpop.permute.xlu1 %3271 }
0x1900   :  { %v4225_v2 = vpop.eup %4224 }
0x1901   :  { %v3107_v38 = vsel %vm149_vm2, %v4225_v2, 0.0  ;;  %v3274_v26 = vpop.permute.xlu1 %3273 }
0x1902   :  { %3108 = vadd.xlane.f32.xlu0 %v3107_v38  ;;  %v3294_v29 = vsel %vm149_vm2, %v4747_v54, %v3274_v26 }
0x1904   :  { %v4227_v9 = vpop.eup %4226 }
0x1905   :  { %v3110_v42 = vsel %vm149_vm2, %v4227_v9, 0.0 }
0x1906   :  { %3111 = vadd.xlane.f32.xlu0 %v3110_v42 }
0x191c   :  { %3193 = vrot.lane.b32.xlu0 %v4688_v11, %s4253_s11 }
0x1920   :  { %3279 = vrot.lane.b32.xlu0 %v2855_v34, %s4255_s13 }
0x198f   :  { %v3109_v51 = vpop.xlane.xlu0 %3108 }
0x1990   :  { %4228 = vrcp.f32 %v3109_v51 }
0x1993   :  { %v3112_v15 = vpop.xlane.xlu0 %3111 }
0x1994   :  { %4230 = vrcp.f32 %v3112_v15 }
0x1997   :  { %v3194_v16 = vpop.permute.xlu0 %3193 }
0x1998   :  { %4019 = vmatpush3.msra.mxu1 %v3194_v16 }
0x1999   :  { %4121 = vmatprep.subr.bf16.mxu1 %v4570_v35 }
0x199a   :  { %v4229_v18 = vpop.eup %4228 }
0x199b   :  { %v3115_v19 = vmul.f32 %v4229_v18, %v4225_v2  ;;  %v3280_v27 = vpop.permute.xlu0 %3279 }
0x199d   :  { %4016 = vmatmul.mubr.msk.f32.vlgmr.msra.gmra.mrb[30].mxu0 %vm149_vm2, %v3115_v19 }
0x199e   :  { %v4231_v20 = vpop.eup %4230  ;;  %4115 = vmatpush3.bf16.msra.mxu0 %v4519_v45 }
0x199f   :  { %v3116_v22 = vmul.f32 %v4231_v20, %v4227_v9  ;;  %4117 = vmatprep.subr.bf16.mxu0 %v4529_v48 }
0x19a1   :  { %4021 = vmatmul.mubr.msk.f32.vlgmr.msra.gmra.mrb[40].mxu1 %vm149_vm2, %v3116_v22 }
0x19a2   :  { %4119 = vmatpush3.bf16.msra.mxu0 %v4529_v48  ;;  %4123 = vmatpush3.bf16.msra.mxu1 %v4570_v35  ;;  %v3293_v48 = vsel %vm149_vm2, %v4745_v50, %v3272_v25  ;;  %v3282_v35 = vpop.permute.xlu1 %3281 }
0x19a3   :  { %4125 = vmatprep.subr.bf16.mxu1 %v4580_v30  ;;  %4129 = vmatprep.subr.bf16.mxu0 %v4594_v39  ;;  %v3295_v28 = vsel %vm1507_vm4, %v3293_v48, %v3280_v27  ;;  %v3296_v31 = vsel %vm1507_vm4, %v3294_v29, %v3282_v35 }
0x19a6   :  { %4127 = vmatpush3.bf16.msra.mxu1 %v4580_v30 }
0x1a70   :  { %v3189_v11 = vpop.f32.mrb[30].mxu0 }
0x1a71   :  { %3287 = vrot.lane.b32.xlu0 %v3189_v11, %s4256_s21  ;;  %v4017_v23 = vpop.f32.mrb[31].mxu0 }
0x1a74   :  { %v3265_v45 = vpop.f32.mrb[40].mxu1 }
0x1a75   :  { %3289 = vrot.lane.b32.xlu1 %v3265_v45, %s4256_s21  ;;  %v4022_v24 = vpop.f32.mrb[41].mxu1 }
0x1ae3   :  { %v3288_v17 = vpop.permute.xlu0 %3287 }
0x1ae4   :  { %v3297_v30 = vsel %vm1510_vm3, %v3295_v28, %v3288_v17 }
0x1ae5   :  { %4031 = vmatprep.mubr.msk.f32.mxu0 %vm64_vm0, %v3297_v30 }
0x1ae7   :  { %v3290_v33 = vpop.permute.xlu1 %3289 }
0x1ae8   :  { %v3298_v7 = vsel %vm1510_vm3, %v3296_v31, %v3290_v33 }
0x1ae9   :  { %4032 = vmatmul.mubr.msk.f32.vlgmr.msra.gmra.mrb[32].mxu0 %vm64_vm0, %v3298_v7 }
0x1aea   :  { %4131 = vmatpush3.bf16.msra.mxu0 %v4594_v39 }
0x1aeb   :  { %4133 = vmatprep.subr.bf16.mxu0 %v4599_v41 }
0x1aee   :  { %4135 = vmatpush3.bf16.msra.mxu0 %v4599_v41 }
0x1aef   :  { %4137 = vmatprep.subr.bf16.mxu0 %v4610_v13 }
0x1af2   :  { %4139 = vmatpush3.bf16.msra.mxu0 %v4610_v13 }
0x1af3   :  { %4141 = vmatprep.subr.bf16.mxu0 %v4639_v10 }
0x1af6   :  { %4143 = vmatpush3.bf16.msra.mxu0 %v4639_v10 }
0x1bbc   :  { %v4033_v50 = vpop.f32.mrb[32].mxu0 }
0x1bbd   :  { %v3377_v54 = vadd.f32 %v4033_v50, %v4554_v14  ;;  %v3371_v5 = vpop.f32.mrb[33].mxu0 }
0x1bbe   :  { %v3372_v34 = vadd.f32 %v3371_v5, %v4554_v14 }
0x1bbf   :  { %v3381_v39 = vadd.f32 %v3377_v54, %v4679_v0 }
0x1bc0   :  { %v3380_v12 = vadd.f32 %v3372_v34, %v4676_v63 }
0x1bc1   :  { %v3385_v41 = vsel %vm64_vm0, %v3381_v39, 0.0 }
0x1bc2   :  { %3386 = vadd.xlane.f32.xlu1 %v3385_v41  ;;  %v3382_v36 = vsel %vm64_vm0, %v3380_v12, 0.0 }
0x1bc3   :  { %3383 = vadd.xlane.f32.xlu0 %v3382_v36 }
0x1c4f   :  { %v3387_v13 = vpop.xlane.xlu1 %3386 }
0x1c50   :  { %v3389_v32 = vmul.f32 0.03125, %v3387_v13  ;;  %v3384_v37 = vpop.xlane.xlu0 %3383 }
0x1c51   :  { %v3388_v10 = vmul.f32 0.03125, %v3384_v37 }
0x1c52   :  { %v3391_v40 = vsub.f32 %v3381_v39, %v3389_v32 }
0x1c53   :  { %v3390_v43 = vsub.f32 %v3380_v12, %v3388_v10 }
0x1c54   :  { %v3393_v14 = vmul.f32 %v3391_v40, %v3391_v40 }
0x1c55   :  { %v3392_v44 = vmul.f32 %v3390_v43, %v3390_v43 }
0x1c56   :  { %v3397_v0 = vsel %vm64_vm0, %v3393_v14, 0.0 }
0x1c57   :  { %v3394_v46 = vsel %vm64_vm0, %v3392_v44, 0.0 }
0x1c58   :  { %3395 = vadd.xlane.f32.xlu0 %v3394_v46 }
0x1c5c   :  { %3398 = vadd.xlane.f32.xlu0 %v3397_v0 }
0x1ce5   :  { %v3396_v63 = vpop.xlane.xlu0 %3395 }
0x1ce6   :  { %v3400_v47 = vmul.f32 0.03125, %v3396_v63 }
0x1ce8   :  { %v3402_v52 = vadd.f32 1e-05, %v3400_v47 }
0x1ce9   :  { %v3399_v55 = vpop.xlane.xlu0 %3398 }
0x1cea   :  { %4232 = vrsqrt.f32 %v3402_v52  ;;  %v3401_v57 = vmul.f32 0.03125, %v3399_v55 }
0x1cec   :  { %v3403_v58 = vadd.f32 1e-05, %v3401_v57 }
0x1cee   :  { %4234 = vrsqrt.f32 %v3403_v58 }
0x1cf4   :  { %v4233_v8 = vpop.eup %4232 }
0x1cf5   :  { %v3406_v61 = vmul.f32 %v4233_v8, %v3390_v43 }
0x1cf7   :  { %v3408_v4 = vmul.f32 %v3406_v61, %v4618_v56 }
0x1cf8   :  { %v4235_v1 = vpop.eup %4234 }
0x1cf9   :  { %v3407_v62 = vmul.f32 %v4235_v1, %v3391_v40  ;;  %v3410_v49 = vadd.f32 %v3408_v4, %v4621_v59 }
0x1cfb   :  { %4042 = vmatprep.mubr.msk.f32.mxu1 %vm64_vm0, %v3410_v49  ;;  %v3409_v6 = vmul.f32 %v3407_v62, %v4618_v56 }
0x1cfd   :  { %v3411_v2 = vadd.f32 %v3409_v6, %v4621_v59 }
0x1cff   :  { %4043 = vmatmul.mubr.msk.f32.vlgmr.msra.gmra.mrb[42].mxu1 %vm64_vm0, %v3411_v2 }
0x1dd2   :  { %v4044_v38 = vpop.f32.mrb[42].mxu1 }
0x1dd3   :  { %v3490_v9 = vadd.f32 %v4044_v38, %v4647_v3  ;;  %v3484_v42 = vpop.f32.mrb[43].mxu1 }
0x1dd4   :  { %v3485_v51 = vadd.f32 %v4647_v3, %v3484_v42 }
0x1dd5   :  { %v3494_v16 = vmax.f32 %v3490_v9, 0.0 }
0x1dd6   :  { %v3493_v15 = vmax.f32 %v3485_v51, 0.0 }
0x1dd8   :  { %4061 = vmatprep.mubr.msk.f32.mxu0 %vm1732_vm5, %v3493_v15 }
0x1dd9   :  { %4062 = vmatmul.mubr.msk.f32.vlgmr.msra.gmra.mrb[34].mxu0 %vm1732_vm5, %v3494_v16 }
0x1eac   :  { %v4063_v18 = vpop.f32.mrb[34].mxu0 }
0x1ead   :  { %v3573_v19 = vadd.f32 %v4063_v18, %v4657_v21  ;;  %v3567_v56 = vpop.f32.mrb[35].mxu0 }
0x1eae   :  { %v3568_v59 = vadd.f32 %v3567_v56, %v4657_v21 }
0x1eaf   :  { %v3577_v20 = vadd.f32 %v3573_v19, %v3411_v2 }
0x1eb0   :  { %v3576_v22 = vadd.f32 %v3568_v59, %v3410_v49 }
0x1eb1   :  { %v3581_v11 = vsel %vm64_vm0, %v3577_v20, 0.0 }
0x1eb2   :  { %3582 = vadd.xlane.f32.xlu0 %v3581_v11  ;;  %v3578_v23 = vsel %vm64_vm0, %v3576_v22, 0.0 }
0x1eb3   :  { %3579 = vadd.xlane.f32.xlu1 %v3578_v23 }
0x1f3f   :  { %v3583_v3 = vpop.xlane.xlu0 %3582 }
0x1f40   :  { %v3585_v45 = vmul.f32 0.03125, %v3583_v3  ;;  %v3580_v24 = vpop.xlane.xlu1 %3579 }
0x1f41   :  { %v3584_v25 = vmul.f32 0.03125, %v3580_v24 }
0x1f42   :  { %v3587_v26 = vsub.f32 %v3577_v20, %v3585_v45 }
0x1f43   :  { %v3586_v27 = vsub.f32 %v3576_v22, %v3584_v25 }
0x1f44   :  { %v3589_v48 = vmul.f32 %v3587_v26, %v3587_v26 }
0x1f45   :  { %v3588_v35 = vmul.f32 %v3586_v27, %v3586_v27 }
0x1f46   :  { %v3593_v28 = vsel %vm64_vm0, %v3589_v48, 0.0 }
0x1f47   :  { %3594 = vadd.xlane.f32.xlu0 %v3593_v28  ;;  %v3590_v21 = vsel %vm64_vm0, %v3588_v35, 0.0 }
0x1f48   :  { %3591 = vadd.xlane.f32.xlu1 %v3590_v21 }
0x1fd4   :  { %v3595_v17 = vpop.xlane.xlu0 %3594 }
0x1fd5   :  { %v3597_v30 = vmul.f32 0.03125, %v3595_v17  ;;  %v3592_v29 = vpop.xlane.xlu1 %3591 }
0x1fd6   :  { %v3596_v31 = vmul.f32 0.03125, %v3592_v29 }
0x1fd7   :  { %v3599_v33 = vadd.f32 1e-05, %v3597_v30 }
0x1fd8   :  { %v3598_v7 = vadd.f32 1e-05, %v3596_v31 }
0x1fd9   :  { %4236 = vrsqrt.f32 %v3599_v33 }
0x1fda   :  { %4238 = vrsqrt.f32 %v3598_v7 }
0x1fe3   :  { %v4237_v50 = vpop.eup %4236 }
0x1fe4   :  { %v4239_v54 = vpop.eup %4238  ;;  %v3603_v5 = vmul.f32 %v4237_v50, %v3587_v26 }
0x1fe5   :  { %v3602_v34 = vmul.f32 %v4239_v54, %v3586_v27 }
0x1fe6   :  { %v3605_v39 = vmul.f32 %v3603_v5, %v4668_v53 }
0x1fe7   :  { %v3604_v12 = vmul.f32 %v3602_v34, %v4668_v53 }
0x1fe8   :  { %v3607_v41 = vadd.f32 %v3605_v39, %v4671_v60 }
0x1fe9   :  { %v3606_v36 = vadd.f32 %v3604_v12, %v4671_v60 }
0x1fea   :  { %3609 = vst.msk [vmem:[%s4921_s9 + $0x8] sm:$0xff] %vm64_vm0, %v3607_v41 }
0x1feb   :  { %3608 = vst.msk [vmem:[%s4921_s9] sm:$0xff] %vm64_vm0, %v3606_v36 }

</bundles_post_ra>
